<compile_context>
chip_gen: v6e
topology: v6e:2x2x1
jax: 0.10.0
libtpu: 0.0.40
codegen_flags: <defaults>
</compile_context>

<pallas_src>
import functools

import jax
import jax.numpy as jnp
from jax.experimental import pallas as pl
from jax.experimental.pallas import tpu as pltpu

BN_EPS = 1e-5


# ---------------------------------------------------------------------------
# Shared in-kernel conv3x3 (in-VMEM im2col: 9 shifted slices -> accumulating dots)
# ---------------------------------------------------------------------------
def _conv3x3_tile(x_ref, w1_ref, H, W, Cin, C1):
    """x_ref block: (1, H+2, W+2, Cin) padded image; w1_ref: (9, Cin, C1).

    Returns the (H*W, C1) f32 conv output for this image (no conv bias: it
    cancels exactly under training-mode BN).
    """
    x = x_ref[0]                                   # (H+2, W+2, Cin) in VMEM
    acc = jnp.zeros((H * W, C1), jnp.float32)      # single f32 accumulator
    for t in range(9):                             # unrolled at trace time
        ky, kx = t // 3, t % 3
        tap = x[ky:ky + H, kx:kx + W, :].reshape(H * W, Cin)
        acc = acc + jnp.dot(tap, w1_ref[t], preferred_element_type=jnp.float32)
    return acc


# ---------------------------------------------------------------------------
# Pass 1: per-image BN partial statistics only (sum, centered M2) — tiny output
# ---------------------------------------------------------------------------
def _stats_kernel(x_ref, w1_ref, stats_ref, *, H, W, Cin, C1):
    acc = _conv3x3_tile(x_ref, w1_ref, H, W, Cin, C1)      # (H*W, C1)
    s = jnp.sum(acc, axis=0, keepdims=True)                 # (1, C1)
    mean = s * (1.0 / (H * W))
    d = acc - mean
    m2 = jnp.sum(d * d, axis=0, keepdims=True)              # (1, C1)
    stats_ref[0, 0:1, :] = s
    stats_ref[0, 1:2, :] = m2


# ---------------------------------------------------------------------------
# Pass 2: recompute conv3x3 -> BN FMA -> ReLU -> conv1x1 (+ bias), true-width store
# ---------------------------------------------------------------------------
def _out_kernel(x_ref, w1_ref, scale_ref, shift_ref, w2_ref, b2_ref, out_ref,
                *, H, W, Cin, C1):
    acc = _conv3x3_tile(x_ref, w1_ref, H, W, Cin, C1)       # (H*W, C1)
    y = jnp.maximum(acc * scale_ref[...] + shift_ref[...], 0.0)
    out = jnp.dot(y, w2_ref[...], preferred_element_type=jnp.float32) + b2_ref[...]
    out_ref[0] = out                                          # (H*W, num_outputs)


def yolo_head_forward(x_nchw, params):
    """x_nchw: (N, Cin, H, W) float32 -> (N, num_outputs, H, W) float32."""
    w1, b1, gamma, beta, w2, b2 = params   # b1 cancels under train-mode BN
    N, Cin, H, W = x_nchw.shape
    C1 = w1.shape[-1]                      # 32
    O = w2.shape[-1]                       # num_outputs
    HW = H * W
    rows = N * HW

    # ---- glue (XLA, 1x data): NCHW -> NHWC, zero-pad H/W for SAME conv ----
    x_nhwc = jnp.transpose(x_nchw, (0, 2, 3, 1))
    x_pad = jnp.pad(x_nhwc, ((0, 0), (1, 1), (1, 1), (0, 0)))   # (N, H+2, W+2, Cin)

    w1p = w1.reshape(9, Cin, C1)           # tap-major (ky*3+kx, Cin, C1)
    gamma2 = gamma.reshape(1, C1)
    beta2 = beta.reshape(1, C1)
    w2p = w2.reshape(C1, O)
    b2p = b2.reshape(1, O)

    cparams = pltpu.CompilerParams(
        dimension_semantics=("parallel",),          # megacore-shardable over images
        vmem_limit_bytes=48 * 1024 * 1024,          # safe on v5e/v6e and v7x (64 MiB/TC)
    )

    conv_flops = 2 * rows * 9 * Cin * C1
    x_bytes = x_pad.size * 4

    # ---- pass 1: tiny per-image BN statistics (no activation round trip) ----
    stats = pl.pallas_call(
        functools.partial(_stats_kernel, H=H, W=W, Cin=Cin, C1=C1),
        out_shape=jax.ShapeDtypeStruct((N, 2, C1), jnp.float32),
        grid=(N,),
        in_specs=[pl.BlockSpec((1, H + 2, W + 2, Cin), lambda n: (n, 0, 0, 0)),
                  pl.BlockSpec((9, Cin, C1), lambda n: (0, 0, 0))],
        out_specs=pl.BlockSpec((1, 2, C1), lambda n: (n, 0, 0)),
        compiler_params=cparams,
        cost_estimate=pl.CostEstimate(
            flops=conv_flops, transcendentals=0,
            bytes_accessed=x_bytes + w1p.size * 4 + N * 2 * C1 * 4),
    )(x_pad, w1p)

    # ---- tiny XLA step: Chan's exact parallel combine -> fused BN scale/shift ----
    sums = stats[:, 0, :]                                   # (N, C1)
    m2s = stats[:, 1, :]                                    # (N, C1)
    mean_i = sums / HW                                      # per-image means
    mean = jnp.sum(sums, axis=0) / rows                     # global mean
    M2 = jnp.sum(m2s, axis=0) + HW * jnp.sum((mean_i - mean[None, :]) ** 2, axis=0)
    var = jnp.maximum(M2 / rows, 0.0)                       # biased var (training BN)
    scale_v = gamma2[0] * jax.lax.rsqrt(var + BN_EPS)       # (C1,)
    shift_v = beta2[0] - mean * scale_v                     # (C1,)
    scale = scale_v[None, :]                                # (1, C1)
    shift = shift_v[None, :]

    # ---- pass 2: recompute conv -> BN FMA -> ReLU -> conv1x1 (true-width store) ----
    out = pl.pallas_call(
        functools.partial(_out_kernel, H=H, W=W, Cin=Cin, C1=C1),
        out_shape=jax.ShapeDtypeStruct((N, HW, O), jnp.float32),
        grid=(N,),
        in_specs=[pl.BlockSpec((1, H + 2, W + 2, Cin), lambda n: (n, 0, 0, 0)),
                  pl.BlockSpec((9, Cin, C1), lambda n: (0, 0, 0)),
                  pl.BlockSpec((1, C1), lambda n: (0, 0)),
                  pl.BlockSpec((1, C1), lambda n: (0, 0)),
                  pl.BlockSpec((C1, O), lambda n: (0, 0)),
                  pl.BlockSpec((1, O), lambda n: (0, 0))],
        out_specs=pl.BlockSpec((1, HW, O), lambda n: (n, 0, 0)),
        compiler_params=cparams,
        cost_estimate=pl.CostEstimate(
            flops=conv_flops + 2 * rows * C1 * O, transcendentals=0,
            bytes_accessed=x_bytes + (w1p.size + w2p.size) * 4 + rows * O * 4),
    )(x_pad, w1p, scale, shift, w2p, b2p)

    out = out.reshape(N, H, W, O)
    return jnp.transpose(out, (0, 3, 1, 2))


def init_params(key, in_channels, num_outputs, c_hidden=32):
    k1, k2, k3, k4, k5, k6 = jax.random.split(key, 6)
    # 3x3 conv weights stored tap-major: (9, Cin, 32)
    w1 = 0.1 * jax.random.normal(k1, (9, in_channels, c_hidden), jnp.float32)
    b1 = 0.1 * jax.random.normal(k2, (1, c_hidden), jnp.float32)
    gamma = 1.0 + 0.1 * jax.random.normal(k3, (1, c_hidden), jnp.float32)
    beta = 0.1 * jax.random.normal(k4, (1, c_hidden), jnp.float32)
    w2 = 0.1 * jax.random.normal(k5, (c_hidden, num_outputs), jnp.float32)
    b2 = 0.1 * jax.random.normal(k6, (1, num_outputs), jnp.float32)
    return (w1, b1, gamma, beta, w2, b2)


def yolo_head_reference(x_nchw, params):
    """Pure-JAX reference (lax.conv) mirroring the PyTorch forward."""
    w1, b1, gamma, beta, w2, b2 = params
    Cin = x_nchw.shape[1]
    c_hidden = w1.shape[-1]
    # (9, Cin, 32) -> OIHW (32, Cin, 3, 3)
    w1_oihw = jnp.transpose(w1.reshape(3, 3, Cin, c_hidden), (3, 2, 0, 1))
    y = jax.lax.conv_general_dilated(
        x_nchw, w1_oihw, window_strides=(1, 1), padding="SAME",
        dimension_numbers=("NCHW", "OIHW", "NCHW"))
    y = y + b1.reshape(1, c_hidden, 1, 1)
    mean = jnp.mean(y, axis=(0, 2, 3), keepdims=True)
    var = jnp.mean((y - mean) ** 2, axis=(0, 2, 3), keepdims=True)
    y = (y - mean) * jax.lax.rsqrt(var + BN_EPS)
    y = y * gamma.reshape(1, c_hidden, 1, 1) + beta.reshape(1, c_hidden, 1, 1)
    y = jnp.maximum(y, 0.0)
    w2_oihw = jnp.transpose(w2, (1, 0))[:, :, None, None]
    out = jax.lax.conv_general_dilated(
        y, w2_oihw, window_strides=(1, 1), padding="VALID",
        dimension_numbers=("NCHW", "OIHW", "NCHW"))
    return out + b2.reshape(1, -1, 1, 1)


if __name__ == "__main__":
    N, Cin, H, W = 2, 4, 16, 16
    num_outputs = 8

    key = jax.random.PRNGKey(0)
    k_x, k_p = jax.random.split(key)
    x = jax.random.normal(k_x, (N, Cin, H, W), jnp.float32)
    params = init_params(k_p, Cin, num_outputs)

    out = yolo_head_forward(x, params)
    out = jax.block_until_ready(out)

    ref = jax.block_until_ready(yolo_head_reference(x, params))
    assert out.shape == (N, num_outputs, H, W)
    assert jnp.allclose(out, ref, rtol=1e-3, atol=2e-3), (
        float(jnp.max(jnp.abs(out - ref))))

    print("KERNEL_OK")
</pallas_src>

<mosaic_0001>
module attributes {stable_mosaic.version = 11 : i64} {
  func.func @_stats_kernel(%arg0: i32, %arg1: memref<1x18x18x4xf32, #tpu.memory_space<vmem>>, %arg2: memref<9x4x32xf32, #tpu.memory_space<vmem>>, %arg3: memref<1x2x32xf32, #tpu.memory_space<vmem>>) attributes {dimension_semantics = [#tpu.dimension_semantics<parallel>], iteration_bounds = array<i64: 2>, scalar_prefetch = 0 : i64, scratch_operands = 0 : i64, tpu.core_type = #tpu.core_type<tc>, window_params = [{transform_indices = @transform_0, window_bounds = array<i64: 1, 18, 18, 4>}, {pipeline_mode = #tpu.pipeline_mode<synchronous>, transform_indices = @transform_1, window_bounds = array<i64: 9, 4, 32>}, {transform_indices = @transform_2, window_bounds = array<i64: 1, 2, 32>}]} {
    %c0 = arith.constant 0 : index
    %c0_0 = arith.constant 0 : index
    %c0_1 = arith.constant 0 : index
    %c0_2 = arith.constant 0 : index
    %0 = vector.load %arg1[%c0, %c0_0, %c0_1, %c0_2] : memref<1x18x18x4xf32, #tpu.memory_space<vmem>>, vector<1x18x18x4xf32>
    %1 = vector.shape_cast %0 : vector<1x18x18x4xf32> to vector<18x18x4xf32>
    %cst = arith.constant 0.000000e+00 : f32
    %2 = vector.broadcast %cst : f32 to vector<256x32xf32>
    %3 = vector.extract_strided_slice %1 {offsets = [0, 0, 0], sizes = [16, 16, 4], strides = [1, 1, 1]} : vector<18x18x4xf32> to vector<16x16x4xf32>
    %4 = vector.shape_cast %3 : vector<16x16x4xf32> to vector<256x4xf32>
    %c0_3 = arith.constant 0 : index
    %c0_4 = arith.constant 0 : index
    %c0_5 = arith.constant 0 : index
    %5 = vector.load %arg2[%c0_3, %c0_4, %c0_5] : memref<9x4x32xf32, #tpu.memory_space<vmem>>, vector<1x4x32xf32>
    %6 = vector.shape_cast %5 : vector<1x4x32xf32> to vector<4x32xf32>
    %cst_6 = arith.constant dense<0.000000e+00> : vector<256x32xf32>
    %7 = tpu.matmul %4, %6, %cst_6 {dimension_numbers = #tpu.dot_dimension_numbers<[1], [0], [0], [1], [0, 0, 1, 1], [], []>} : vector<256x4xf32>, vector<4x32xf32>, vector<256x32xf32> -> vector<256x32xf32>
    %8 = arith.addf %2, %7 : vector<256x32xf32>
    %9 = vector.extract_strided_slice %1 {offsets = [0, 1, 0], sizes = [16, 16, 4], strides = [1, 1, 1]} : vector<18x18x4xf32> to vector<16x16x4xf32>
    %10 = vector.shape_cast %9 : vector<16x16x4xf32> to vector<256x4xf32>
    %c1 = arith.constant 1 : index
    %c0_7 = arith.constant 0 : index
    %c0_8 = arith.constant 0 : index
    %11 = vector.load %arg2[%c1, %c0_7, %c0_8] : memref<9x4x32xf32, #tpu.memory_space<vmem>>, vector<1x4x32xf32>
    %12 = vector.shape_cast %11 : vector<1x4x32xf32> to vector<4x32xf32>
    %cst_9 = arith.constant dense<0.000000e+00> : vector<256x32xf32>
    %13 = tpu.matmul %10, %12, %cst_9 {dimension_numbers = #tpu.dot_dimension_numbers<[1], [0], [0], [1], [0, 0, 1, 1], [], []>} : vector<256x4xf32>, vector<4x32xf32>, vector<256x32xf32> -> vector<256x32xf32>
    %14 = arith.addf %8, %13 : vector<256x32xf32>
    %15 = vector.extract_strided_slice %1 {offsets = [0, 2, 0], sizes = [16, 16, 4], strides = [1, 1, 1]} : vector<18x18x4xf32> to vector<16x16x4xf32>
    %16 = vector.shape_cast %15 : vector<16x16x4xf32> to vector<256x4xf32>
    %c2 = arith.constant 2 : index
    %c0_10 = arith.constant 0 : index
    %c0_11 = arith.constant 0 : index
    %17 = vector.load %arg2[%c2, %c0_10, %c0_11] : memref<9x4x32xf32, #tpu.memory_space<vmem>>, vector<1x4x32xf32>
    %18 = vector.shape_cast %17 : vector<1x4x32xf32> to vector<4x32xf32>
    %cst_12 = arith.constant dense<0.000000e+00> : vector<256x32xf32>
    %19 = tpu.matmul %16, %18, %cst_12 {dimension_numbers = #tpu.dot_dimension_numbers<[1], [0], [0], [1], [0, 0, 1, 1], [], []>} : vector<256x4xf32>, vector<4x32xf32>, vector<256x32xf32> -> vector<256x32xf32>
    %20 = arith.addf %14, %19 : vector<256x32xf32>
    %21 = vector.extract_strided_slice %1 {offsets = [1, 0, 0], sizes = [16, 16, 4], strides = [1, 1, 1]} : vector<18x18x4xf32> to vector<16x16x4xf32>
    %22 = vector.shape_cast %21 : vector<16x16x4xf32> to vector<256x4xf32>
    %c3 = arith.constant 3 : index
    %c0_13 = arith.constant 0 : index
    %c0_14 = arith.constant 0 : index
    %23 = vector.load %arg2[%c3, %c0_13, %c0_14] : memref<9x4x32xf32, #tpu.memory_space<vmem>>, vector<1x4x32xf32>
    %24 = vector.shape_cast %23 : vector<1x4x32xf32> to vector<4x32xf32>
    %cst_15 = arith.constant dense<0.000000e+00> : vector<256x32xf32>
    %25 = tpu.matmul %22, %24, %cst_15 {dimension_numbers = #tpu.dot_dimension_numbers<[1], [0], [0], [1], [0, 0, 1, 1], [], []>} : vector<256x4xf32>, vector<4x32xf32>, vector<256x32xf32> -> vector<256x32xf32>
    %26 = arith.addf %20, %25 : vector<256x32xf32>
    %27 = vector.extract_strided_slice %1 {offsets = [1, 1, 0], sizes = [16, 16, 4], strides = [1, 1, 1]} : vector<18x18x4xf32> to vector<16x16x4xf32>
    %28 = vector.shape_cast %27 : vector<16x16x4xf32> to vector<256x4xf32>
    %c4 = arith.constant 4 : index
    %c0_16 = arith.constant 0 : index
    %c0_17 = arith.constant 0 : index
    %29 = vector.load %arg2[%c4, %c0_16, %c0_17] : memref<9x4x32xf32, #tpu.memory_space<vmem>>, vector<1x4x32xf32>
    %30 = vector.shape_cast %29 : vector<1x4x32xf32> to vector<4x32xf32>
    %cst_18 = arith.constant dense<0.000000e+00> : vector<256x32xf32>
    %31 = tpu.matmul %28, %30, %cst_18 {dimension_numbers = #tpu.dot_dimension_numbers<[1], [0], [0], [1], [0, 0, 1, 1], [], []>} : vector<256x4xf32>, vector<4x32xf32>, vector<256x32xf32> -> vector<256x32xf32>
    %32 = arith.addf %26, %31 : vector<256x32xf32>
    %33 = vector.extract_strided_slice %1 {offsets = [1, 2, 0], sizes = [16, 16, 4], strides = [1, 1, 1]} : vector<18x18x4xf32> to vector<16x16x4xf32>
    %34 = vector.shape_cast %33 : vector<16x16x4xf32> to vector<256x4xf32>
    %c5 = arith.constant 5 : index
    %c0_19 = arith.constant 0 : index
    %c0_20 = arith.constant 0 : index
    %35 = vector.load %arg2[%c5, %c0_19, %c0_20] : memref<9x4x32xf32, #tpu.memory_space<vmem>>, vector<1x4x32xf32>
    %36 = vector.shape_cast %35 : vector<1x4x32xf32> to vector<4x32xf32>
    %cst_21 = arith.constant dense<0.000000e+00> : vector<256x32xf32>
    %37 = tpu.matmul %34, %36, %cst_21 {dimension_numbers = #tpu.dot_dimension_numbers<[1], [0], [0], [1], [0, 0, 1, 1], [], []>} : vector<256x4xf32>, vector<4x32xf32>, vector<256x32xf32> -> vector<256x32xf32>
    %38 = arith.addf %32, %37 : vector<256x32xf32>
    %39 = vector.extract_strided_slice %1 {offsets = [2, 0, 0], sizes = [16, 16, 4], strides = [1, 1, 1]} : vector<18x18x4xf32> to vector<16x16x4xf32>
    %40 = vector.shape_cast %39 : vector<16x16x4xf32> to vector<256x4xf32>
    %c6 = arith.constant 6 : index
    %c0_22 = arith.constant 0 : index
    %c0_23 = arith.constant 0 : index
    %41 = vector.load %arg2[%c6, %c0_22, %c0_23] : memref<9x4x32xf32, #tpu.memory_space<vmem>>, vector<1x4x32xf32>
    %42 = vector.shape_cast %41 : vector<1x4x32xf32> to vector<4x32xf32>
    %cst_24 = arith.constant dense<0.000000e+00> : vector<256x32xf32>
    %43 = tpu.matmul %40, %42, %cst_24 {dimension_numbers = #tpu.dot_dimension_numbers<[1], [0], [0], [1], [0, 0, 1, 1], [], []>} : vector<256x4xf32>, vector<4x32xf32>, vector<256x32xf32> -> vector<256x32xf32>
    %44 = arith.addf %38, %43 : vector<256x32xf32>
    %45 = vector.extract_strided_slice %1 {offsets = [2, 1, 0], sizes = [16, 16, 4], strides = [1, 1, 1]} : vector<18x18x4xf32> to vector<16x16x4xf32>
    %46 = vector.shape_cast %45 : vector<16x16x4xf32> to vector<256x4xf32>
    %c7 = arith.constant 7 : index
    %c0_25 = arith.constant 0 : index
    %c0_26 = arith.constant 0 : index
    %47 = vector.load %arg2[%c7, %c0_25, %c0_26] : memref<9x4x32xf32, #tpu.memory_space<vmem>>, vector<1x4x32xf32>
    %48 = vector.shape_cast %47 : vector<1x4x32xf32> to vector<4x32xf32>
    %cst_27 = arith.constant dense<0.000000e+00> : vector<256x32xf32>
    %49 = tpu.matmul %46, %48, %cst_27 {dimension_numbers = #tpu.dot_dimension_numbers<[1], [0], [0], [1], [0, 0, 1, 1], [], []>} : vector<256x4xf32>, vector<4x32xf32>, vector<256x32xf32> -> vector<256x32xf32>
    %50 = arith.addf %44, %49 : vector<256x32xf32>
    %51 = vector.extract_strided_slice %1 {offsets = [2, 2, 0], sizes = [16, 16, 4], strides = [1, 1, 1]} : vector<18x18x4xf32> to vector<16x16x4xf32>
    %52 = vector.shape_cast %51 : vector<16x16x4xf32> to vector<256x4xf32>
    %c8 = arith.constant 8 : index
    %c0_28 = arith.constant 0 : index
    %c0_29 = arith.constant 0 : index
    %53 = vector.load %arg2[%c8, %c0_28, %c0_29] : memref<9x4x32xf32, #tpu.memory_space<vmem>>, vector<1x4x32xf32>
    %54 = vector.shape_cast %53 : vector<1x4x32xf32> to vector<4x32xf32>
    %cst_30 = arith.constant dense<0.000000e+00> : vector<256x32xf32>
    %55 = tpu.matmul %52, %54, %cst_30 {dimension_numbers = #tpu.dot_dimension_numbers<[1], [0], [0], [1], [0, 0, 1, 1], [], []>} : vector<256x4xf32>, vector<4x32xf32>, vector<256x32xf32> -> vector<256x32xf32>
    %56 = arith.addf %50, %55 : vector<256x32xf32>
    %cst_31 = arith.constant dense<0.000000e+00> : vector<32xf32>
    %57 = vector.multi_reduction <add>, %56, %cst_31 [0] : vector<256x32xf32> to vector<32xf32>
    %58 = vector.shape_cast %57 : vector<32xf32> to vector<1x32xf32>
    %cst_32 = arith.constant 3.906250e-03 : f32
    %59 = vector.broadcast %cst_32 : f32 to vector<1x32xf32>
    %60 = arith.mulf %58, %59 : vector<1x32xf32>
    %61 = vector.broadcast %60 : vector<1x32xf32> to vector<256x32xf32>
    %62 = arith.subf %56, %61 : vector<256x32xf32>
    %63 = arith.mulf %62, %62 : vector<256x32xf32>
    %cst_33 = arith.constant dense<0.000000e+00> : vector<32xf32>
    %64 = vector.multi_reduction <add>, %63, %cst_33 [0] : vector<256x32xf32> to vector<32xf32>
    %65 = vector.shape_cast %64 : vector<32xf32> to vector<1x32xf32>
    %c0_34 = arith.constant 0 : index
    %c0_35 = arith.constant 0 : index
    %c0_36 = arith.constant 0 : index
    %66 = vector.load %arg3[%c0_34, %c0_35, %c0_36] : memref<1x2x32xf32, #tpu.memory_space<vmem>>, vector<1x1x32xf32>
    %67 = vector.shape_cast %66 : vector<1x1x32xf32> to vector<1x32xf32>
    %68 = vector.shape_cast %58 : vector<1x32xf32> to vector<1x1x32xf32>
    tpu.vector_store %arg3[%c0_34, %c0_35, %c0_36], %68 {strides = array<i32>} : memref<1x2x32xf32, #tpu.memory_space<vmem>>, vector<1x1x32xf32>,
    %c0_37 = arith.constant 0 : index
    %c1_38 = arith.constant 1 : index
    %c0_39 = arith.constant 0 : index
    %69 = vector.load %arg3[%c0_37, %c1_38, %c0_39] : memref<1x2x32xf32, #tpu.memory_space<vmem>>, vector<1x1x32xf32>
    %70 = vector.shape_cast %69 : vector<1x1x32xf32> to vector<1x32xf32>
    %71 = vector.shape_cast %65 : vector<1x32xf32> to vector<1x1x32xf32>
    tpu.vector_store %arg3[%c0_37, %c1_38, %c0_39], %71 {strides = array<i32>} : memref<1x2x32xf32, #tpu.memory_space<vmem>>, vector<1x1x32xf32>,
    return
  }
  func.func @transform_0(%arg0: i32) -> (i32, i32, i32, i32) {
    %c0_i32 = arith.constant 0 : i32
    %c0_i32_0 = arith.constant 0 : i32
    %c0_i32_1 = arith.constant 0 : i32
    %c0_i32_2 = arith.constant 0 : i32
    return %arg0, %c0_i32, %c0_i32_0, %c0_i32_1 : i32, i32, i32, i32
  }
  func.func @transform_1(%arg0: i32) -> (i32, i32, i32) {
    %c0_i32 = arith.constant 0 : i32
    %c0_i32_0 = arith.constant 0 : i32
    %c0_i32_1 = arith.constant 0 : i32
    %c0_i32_2 = arith.constant 0 : i32
    return %c0_i32, %c0_i32_0, %c0_i32_1 : i32, i32, i32
  }
  func.func @transform_2(%arg0: i32) -> (i32, i32, i32) {
    %c0_i32 = arith.constant 0 : i32
    %c0_i32_0 = arith.constant 0 : i32
    %c0_i32_1 = arith.constant 0 : i32
    return %arg0, %c0_i32, %c0_i32_0 : i32, i32, i32
  }
}

</mosaic_0001>

<bundles_post_ra>
// kernel: tpu_custom_call.1
= control target key start
LH: loop header
LB: loop body
LE: loop exit
PB: predicated region body
PF: predicated region fallthrough
CT: control target
= control target key end

     0   :  { %7 = vsyncpa [#allocation3], 0  ;;  %s6286_s0 = inlined_call_operand.vmem [shape: f32[2,18,18,4], index: 0, kind: input, shape index: {}]   ;;  %s6287_s1 = inlined_call_operand.vmem [shape: f32[9,4,32], index: 1, kind: input, shape index: {}]   ;;  %s6288_s2 = inlined_call_operand.hbm [shape: f32[2,2,32], index: 2, kind: output, shape index: {}]  }
   0x1   :  { %9 = vsyncpa [#allocation3 + $0x1], 0  ;;  %s4405_s9 = smov 0   ;;  %s4407_s10 = smov 0  }
   0x2   :  { %s4409_s11 = smov 0   ;;  %s4411_s12 = smov 0  }
   0x3 LB: > { %s4426_s13 = sadd.s32 4294967295, %s4387_s12   ;;  %s3223_s14 = sadd.s32 4294967294, %s4387_s12   ;;  %s4387_s12 = sphi %s4411_s12, %s6530_s12   ;;  %s4383_s11 = sphi %s4409_s11, %s6529_s11   ;;  %s4379_s10 = sphi %s4407_s10, %s6528_s10   ;;  %s4375_s9 = sphi %s4405_s9, %s6527_s9  }
   0x4   : > { %s4430_s15 = sadd.s32 1, %s4387_s12   ;;  %s69_s16 = sadd.s32 1, %s4383_s11 }
   0x5   : > { %s66_s17 = ssub.s32 %s4387_s12, %s4430_s15  ;;  %p79_p0 = scmp.ne.s32.totalorder %s4383_s11, %s4379_s10 }
   0x6   : > { %p67_p1 = scmp.eq.s32.totalorder %s66_s17, 0  ;;  %p80_p2 = scmp.eq.s32.totalorder %s4426_s13, 1 }
   0x7   : > { %p85_p3 = scmp.ne.s32.totalorder %s4379_s10, %s4375_s9  ;;  %p86_p4 = scmp.eq.s32.totalorder %s3223_s14, 1 }
   0x8   : > { %s4441_s18 = scalar_select %p67_p1, %s4383_s11, %s69_s16  }
   0x9   : > { %p4443_p5 = por %p80_p2, %p79_p0  ;;  %p4447_p6 = por %p86_p4, %p85_p3 }
   0xa   : > { %p3226_p7 = scmp.ge.s32.totalorder %s4387_s12, 1  ;;  %p115_p8 = scmp.lt.s32.totalorder %s4387_s12, 3 }
   0xc   : > { %p116_p9 = pnand %p3226_p7, %p115_p8 }
   0xe   : > { %119 = sbr.rel (%p116_p9) target bundleno = 631 (0x277), region = 28 }
  0x13   : > { %v3229_v0 = vld [vmem:[%s6287_s1 + $0x4] sm:$0xf]  ;;  %vm393_vm0 = vcmask 1043456   ;;  %p137_p10 = scmp.lt.s32.totalorder %s4426_s13, 1  ;;  %v196_v1 = vld [vmem:[%s6287_s1] sm:$0xf] }
  0x14   : > { %4285 = vmatprep.subr.msk.mxu1 %vm393_vm0, %v3229_v0  ;;  %3835 = vmatprep.subr.msk.mxu0 %vm393_vm0, %v3229_v0  ;;  %v3296_v2 = vld [vmem:[%s6287_s1 + $0x8] sm:$0xf]  ;;  %vm245_vm1 = vcmask 1046528   ;;  %vm328_vm2 = vcmask 31744   ;;  %v4516_v21 = vld [vmem:[%s6287_s1 + $0xc] sm:$0xf] }
  0x15   : > { %4286 = vmatpush3.msk.msra.mxu1 %vm393_vm0, %v3229_v0  ;;  %3836 = vmatpush3.msk.msra.mxu0 %vm393_vm0, %v3229_v0  ;;  %s138_s27 = scalar_select %p137_p10, %s4426_s13, 1  ;;  %v4534_v28 = vld [vmem:[%s6287_s1 + $0x10] sm:$0xf]  ;;  %vm914_vm3 = vcmask 1045504   ;;  %vm2943_vm4 = vcmask 261120   ;;  %vm3147_vm5 = vcmask 253952  }
  0x16   : > { %3885 = vmatprep.subr.msk.mxu1 %vm393_vm0, %v196_v1  ;;  %3935 = vmatprep.subr.msk.mxu0 %vm393_vm0, %v3296_v2  ;;  %s134_s25 = sand.u32 1, %s4379_s10   ;;  %s4389_s7 = smov [#allocation2]  }
  0x17   : > { %s4287_s28 = smul.u32 432, %s138_s27  ;;  %s3227_s26 = sshll.u32 %s134_s25, 1 }
  0x18   : > { %s6110_s27 = scalar_lea.vmem [#allocation2], %s3227_s26  ;;  %s3151_s5 = scalar_lea.sflag [#allocation3], %s134_s25 }
  0x19   : > { %s4473_s3 = scalar_lea.vmem %s6286_s0, %s4287_s28  ;;  %s3535_s28 = sshll.u32 %s4426_s13, 5 }
  0x1a   : > { %v4476_v3 = vld [vmem:[%s4473_s3] sm:$0xff]  ;;  %v4479_v4 = vld [vmem:[%s4473_s3 + $0x8] sm:$0xff]  ;;  %v4491_v10 = vld [vmem:[%s4473_s3 + $0x10] sm:$0x3]  ;;  %s3164_s29 = sshll.u32 %s6110_s27, 4  ;;  %s3162_s4 = scalar_lea.hbm %s6288_s2, %s3535_s28  ;;  %s3165_s29 = int_to_ptr.vmem [resolvable:$true] %s3164_s29 }
  0x1b   : > { %v4482_v5 = vld [vmem:[%s4473_s3 + $0xc0] sm:$0xff]  ;;  %v246_v6 = vrot.slane %v4476_v3, 1  ;;  %v247_v7 = vrot.slane %v4479_v4, 1  ;;  %v4487_v8 = vld [vmem:[%s4473_s3 + $0xc8] sm:$0xff]  ;;  %v249_v12 = vrot.slane %v4491_v10, 1  ;;  %v4499_v14 = vld [vmem:[%s4473_s3 + $0x18] sm:$0xff] }
  0x1c   : > { %v286_v9 = vrot.slane %v4482_v5, 1  ;;  %v287_v11 = vrot.slane %v4487_v8, 1  ;;  %v4496_v13 = vld [vmem:[%s4473_s3 + $0xd0] sm:$0x3]  ;;  %v4504_v17 = vld [vmem:[%s4473_s3 + $0x20] sm:$0xff]  ;;  %v251_v18 = vrot.slane %v4499_v14, 1 }
  0x1d   : > { %v248_v15 = vsel %vm245_vm1, %v246_v6, %v247_v7  ;;  %v289_v16 = vrot.slane %v4496_v13, 1  ;;  %v4508_v19 = vld [vmem:[%s4473_s3 + $0xd8] sm:$0xff]  ;;  %v4511_v20 = vld [vmem:[%s4473_s3 + $0xe0] sm:$0xff]  ;;  %v250_v23 = vsel %vm245_vm1, %v247_v7, %v249_v12  ;;  %v252_v24 = vrot.slane %v4504_v17, 1  ;;  %v4526_v26 = vld [vmem:[%s4473_s3 + $0x28] sm:$0x3] }
  0x1e   : > { %3837 = vmatprep.mubr.msk.f32.mxu0 %vm328_vm2, %v248_v15  ;;  %v4520_v22 = vsel %vm245_vm1, %v286_v9, %v287_v11  ;;  %v291_v25 = vrot.slane %v4508_v19, 1  ;;  %v4529_v27 = vld [vmem:[%s4473_s3 + $0xe8] sm:$0x3]  ;;  %v292_v30 = vrot.slane %v4511_v20, 1  ;;  %v254_v31 = vrot.slane %v4526_v26, 1  ;;  %v4546_v33 = vld [vmem:[%s4473_s3 + $0x30] sm:$0xff] }
  0x1f   : > { %6373 = vst [vmem:[#allocation5_spill] sm:$0xff] %v4520_v22  ;;  %3861 = vmatprep.mubr.msk.f32.mxu1 %vm328_vm2, %v4520_v22  ;;  %3838 = vmatmul.mubr.msk.f32.vlgmr.msra.gmra.mxu0 %vm328_vm2, %v250_v23  ;;  %v4540_v29 = vsel %vm245_vm1, %v287_v11, %v289_v16  ;;  %v294_v32 = vrot.slane %v4529_v27, 1  ;;  %v4549_v34 = vld [vmem:[%s4473_s3 + $0x38] sm:$0xff]  ;;  %v4552_v35 = vld [vmem:[%s4473_s3 + $0xf0] sm:$0xff]  ;;  %v4558_v36 = vsel %vm245_vm1, %v251_v18, %v252_v24  ;;  %v256_v37 = vrot.slane %v4546_v33, 1  ;;  %v4586_v47 = vld [vmem:[%s4473_s3 + $0x48] sm:$0xff] }
  0x20   : > { %6374 = vst [vmem:[#allocation6_spill] sm:$0xff] %v4540_v29  ;;  %3862 = vmatmul.mubr.msk.f32.vlgmr.msra.gmra.mxu1 %vm328_vm2, %v4540_v29  ;;  %3936 = vmatpush3.msk.msra.mxu0 %vm393_vm0, %v3296_v2  ;;  %6375 = vst [vmem:[#allocation7_spill] sm:$0xff] %v4558_v36  ;;  %v257_v38 = vrot.slane %v4549_v34, 1  ;;  %v4563_v39 = vld [vmem:[%s4473_s3 + $0xf8] sm:$0xff]  ;;  %v296_v40 = vrot.slane %v4552_v35, 1  ;;  %v4573_v42 = vsel %vm245_vm1, %v291_v25, %v292_v30  ;;  %v4589_v48 = vld [vmem:[%s4473_s3 + $0x50] sm:$0xff] }
  0x21   : > { %v4567_v41 = vld [vmem:[%s4473_s3 + $0x40] sm:$0x3]  ;;  %3886 = vmatpush3.msk.msra.mxu1 %vm393_vm0, %v196_v1  ;;  %3840 = vmatprep.mubr.msk.f32.mxu0 %vm328_vm2, %v4558_v36  ;;  %6376 = vst [vmem:[#allocation8_spill] sm:$0xff] %v4573_v42  ;;  %v4576_v43 = vsel %vm245_vm1, %v252_v24, %v254_v31  ;;  %v4579_v44 = vsel %vm245_vm1, %v292_v30, %v294_v32  ;;  %v297_v45 = vrot.slane %v4563_v39, 1  ;;  %v261_v52 = vrot.slane %v4586_v47, 1  ;;  %v4600_v53 = vld [vmem:[%s4473_s3 + $0x108] sm:$0xff] }
  0x22   : > { %6377 = vst [vmem:[#allocation9_spill] sm:$0xff] %v4576_v43  ;;  %6378 = vst [vmem:[#allocation10_spill] sm:$0xff] %v4579_v44  ;;  %v4583_v46 = vld [vmem:[%s4473_s3 + $0x100] sm:$0x3]  ;;  %3864 = vmatprep.mubr.msk.f32.mxu1 %vm328_vm2, %v4573_v42  ;;  %v4594_v49 = vsel %vm245_vm1, %v256_v37, %v257_v38  ;;  %v259_v50 = vrot.slane %v4567_v41, 1  ;;  %v4603_v54 = vld [vmem:[%s4473_s3 + $0x110] sm:$0xff]  ;;  %3985 = vmatprep.subr.msk.mxu1 %vm393_vm0, %v4516_v21 }
  0x23   : > { %6379 = vst [vmem:[#allocation11_spill] sm:$0xff] %v4594_v49  ;;  %v299_v51 = vrot.slane %v4583_v46, 1  ;;  %v4606_v55 = vld [vmem:[%s4473_s3 + $0x60] sm:$0xff]  ;;  %3841 = vmatmul.mubr.msk.f32.gmra.mxu0 %vm328_vm2, %v4576_v43  ;;  %v4613_v56 = vsel %vm245_vm1, %v296_v40, %v297_v45  ;;  %v262_v57 = vrot.slane %v4589_v48, 1  ;;  %v301_v58 = vrot.slane %v4600_v53, 1  ;;  %v4622_v61 = vld [vmem:[%s4473_s3 + $0x68] sm:$0xff]  ;;  %4035 = vmatprep.subr.msk.mxu0 %vm393_vm0, %v4534_v28 }
  0x24   : > { %6380 = vst [vmem:[#allocation12_spill] sm:$0xff] %v4613_v56  ;;  %v302_v59 = vrot.slane %v4603_v54, 1  ;;  %v4619_v60 = vld [vmem:[%s4473_s3 + $0x58] sm:$0x3]  ;;  %3865 = vmatmul.mubr.msk.f32.gmra.mxu1 %vm328_vm2, %v4579_v44  ;;  %3843 = vmatprep.mubr.msk.f32.mxu0 %vm328_vm2, %v4594_v49  ;;  %v4631_v62 = vsel %vm245_vm1, %v257_v38, %v259_v50  ;;  %v266_v1 = vrot.slane %v4606_v55, 1  ;;  %v4639_v2 = vld [vmem:[%s4473_s3 + $0x120] sm:$0xff] }
  0x25   : > { %6381 = vst [vmem:[#allocation13_spill] sm:$0xff] %v4631_v62  ;;  %v264_v63 = vrot.slane %v4619_v60, 1  ;;  %v4635_v0 = vld [vmem:[%s4473_s3 + $0x118] sm:$0x3]  ;;  %v4642_v6 = vld [vmem:[%s4473_s3 + $0x128] sm:$0xff]  ;;  %3867 = vmatprep.mubr.msk.f32.mxu1 %vm328_vm2, %v4613_v56  ;;  %v4647_v7 = vsel %vm245_vm1, %v297_v45, %v299_v51  ;;  %v4650_v9 = vsel %vm245_vm1, %v261_v52, %v262_v57  ;;  %v267_v12 = vrot.slane %v4622_v61, 1 }
  0x26   : > { %6382 = vst [vmem:[#allocation14_spill] sm:$0xff] %v4647_v7  ;;  %6383 = vst [vmem:[#allocation15_spill] sm:$0xff] %v4650_v9  ;;  %v304_v11 = vrot.slane %v4635_v0, 1  ;;  %v4655_v15 = vld [vmem:[%s4473_s3 + $0x70] sm:$0x3]  ;;  %v4661_v18 = vsel %vm245_vm1, %v301_v58, %v302_v59  ;;  %v306_v23 = vrot.slane %v4639_v2, 1 }
  0x27   : > { %v4658_v16 = vld [vmem:[%s4473_s3 + $0x130] sm:$0x3]  ;;  %6384 = vst [vmem:[#allocation16_spill] sm:$0xff] %v4661_v18  ;;  %v307_v24 = vrot.slane %v4642_v6, 1  ;;  %v4666_v25 = vld [vmem:[%s4473_s3 + $0x78] sm:$0xff]  ;;  %v4669_v30 = vld [vmem:[%s4473_s3 + $0x80] sm:$0xff]  ;;  %3844 = vmatmul.mubr.msk.f32.gmra.mxu0 %vm328_vm2, %v4631_v62  ;;  %v4684_v37 = vsel %vm245_vm1, %v262_v57, %v264_v63  ;;  %v4694_v50 = vsel %vm245_vm1, %v266_v1, %v267_v12 }
  0x28   : > { %v4674_v31 = vld [vmem:[%s4473_s3 + $0x138] sm:$0xff]  ;;  %v4677_v32 = vld [vmem:[%s4473_s3 + $0x140] sm:$0xff]  ;;  %3868 = vmatmul.mubr.msk.f32.gmra.mxu1 %vm328_vm2, %v4647_v7  ;;  %3846 = vmatprep.mubr.msk.f32.mxu0 %vm328_vm2, %v4650_v9  ;;  %6385 = vst [vmem:[#allocation17_spill] sm:$0xff] %v4684_v37  ;;  %v269_v38 = vrot.slane %v4655_v15, 1  ;;  %v309_v40 = vrot.slane %v4658_v16, 1  ;;  %v4691_v45 = vsel %vm245_vm1, %v302_v59, %v304_v11  ;;  %6387 = vst [vmem:[#allocation19_spill] sm:$0xff] %v4694_v50 }
  0x29   : > { %3870 = vmatprep.mubr.msk.f32.mxu1 %vm328_vm2, %v4661_v18  ;;  %6386 = vst [vmem:[#allocation18_spill] sm:$0xff] %v4691_v45  ;;  %v271_v51 = vrot.slane %v4666_v25, 1  ;;  %v272_v52 = vrot.slane %v4669_v30, 1  ;;  %v4699_v57 = vld [vmem:[%s4473_s3 + $0x88] sm:$0x3]  ;;  %v4705_v63 = vsel %vm245_vm1, %v306_v23, %v307_v24  ;;  %v311_v7 = vrot.slane %v4674_v31, 1 }
  0x2a   : > { %v4702_v58 = vld [vmem:[%s4473_s3 + $0x148] sm:$0x3]  ;;  %6388 = vst [vmem:[#allocation20_spill] sm:$0xff] %v4705_v63  ;;  %v312_v18 = vrot.slane %v4677_v32, 1  ;;  %v4710_v59 = vld [vmem:[%s4473_s3 + $0x90] sm:$0xff]  ;;  %v4713_v1 = vld [vmem:[%s4473_s3 + $0x98] sm:$0xff]  ;;  %v4728_v23 = vsel %vm245_vm1, %v267_v12, %v269_v38  ;;  %v4735_v29 = vsel %vm245_vm1, %v307_v24, %v309_v40 }
  0x2b   : > { %3847 = vmatmul.mubr.msk.f32.gmra.mxu0 %vm328_vm2, %v4684_v37  ;;  %v4718_v11 = vld [vmem:[%s4473_s3 + $0x150] sm:$0xff]  ;;  %v4721_v56 = vld [vmem:[%s4473_s3 + $0x158] sm:$0xff]  ;;  %6390 = vst [vmem:[#allocation22_spill] sm:$0xff] %v4728_v23  ;;  %v274_v44 = vrot.slane %v4699_v57, 1  ;;  %v314_v42 = vrot.slane %v4702_v58, 1  ;;  %6391 = vst [vmem:[#allocation23_spill] sm:$0xff] %v4735_v29 }
  0x2c   : > { %6389 = vst [vmem:[#allocation21_spill] sm:$0xff] %v4721_v56  ;;  %3871 = vmatmul.mubr.msk.f32.gmra.mxu1 %vm328_vm2, %v4691_v45  ;;  %3849 = vmatprep.mubr.msk.f32.mxu0 %vm328_vm2, %v4694_v50  ;;  %v4738_v45 = vsel %vm245_vm1, %v271_v51, %v272_v52  ;;  %v276_v22 = vrot.slane %v4710_v59, 1  ;;  %v277_v12 = vrot.slane %v4713_v1, 1  ;;  %v4743_v38 = vld [vmem:[%s4473_s3 + $0xa0] sm:$0x3]  ;;  %v4746_v50 = vsel %vm245_vm1, %v311_v7, %v312_v18  ;;  %v4754_v24 = vld [vmem:[%s4473_s3 + $0xa8] sm:$0xff] }
  0x2d   : > { %3873 = vmatprep.mubr.msk.f32.mxu1 %vm328_vm2, %v4705_v63  ;;  %6392 = vst [vmem:[#allocation24_spill] sm:$0xff] %v4738_v45  ;;  %6393 = vst [vmem:[#allocation25_spill] sm:$0xff] %v4746_v50  ;;  %v316_v37 = vrot.slane %v4718_v11, 1  ;;  %v317_v9 = vrot.slane %v4721_v56, 1  ;;  %v4751_v63 = vld [vmem:[%s4473_s3 + $0x160] sm:$0x3]  ;;  %v4772_v7 = vsel %vm245_vm1, %v272_v52, %v274_v44  ;;  %v4775_v49 = vsel %vm245_vm1, %v312_v18, %v314_v42 }
  0x2e   : > { %v4757_v40 = vld [vmem:[%s4473_s3 + $0xb0] sm:$0xff]  ;;  %v4762_v51 = vld [vmem:[%s4473_s3 + $0x168] sm:$0xff]  ;;  %6395 = vst [vmem:[#allocation27_spill] sm:$0xff] %v4772_v7  ;;  %6396 = vst [vmem:[#allocation28_spill] sm:$0xff] %v4775_v49  ;;  %v279_v43 = vrot.slane %v4743_v38, 1  ;;  %v319_v36 = vrot.slane %v4751_v63, 1 }
  0x2f   : > { %3850 = vmatmul.mubr.msk.f32.gmra.mxu0 %vm328_vm2, %v4728_v23  ;;  %v4765_v62 = vld [vmem:[%s4473_s3 + $0x170] sm:$0xff]  ;;  %v4781_v23 = vsel %vm245_vm1, %v276_v22, %v277_v12  ;;  %v4787_v56 = vld [vmem:[%s4473_s3 + $0xb8] sm:$0x3]  ;;  %v4790_v44 = vsel %vm245_vm1, %v316_v37, %v317_v9  ;;  %v321_v42 = vrot.slane %v4762_v51, 1  ;;  %s4327_s6 = scalar_lea.vmem %s3165_s29, 32  ;;  %s4331_s8 = sshll.u32 %s4389_s7, 4  ;;  %s4332_s8 = int_to_ptr.vmem [resolvable:$false] %s4331_s8 }
  0x30   : > { %6394 = vst [vmem:[#allocation26_spill] sm:$0xff] %v4765_v62  ;;  %3874 = vmatmul.mubr.msk.f32.gmra.mxu1 %vm328_vm2, %v4735_v29  ;;  %3852 = vmatprep.mubr.msk.f32.mxu0 %vm328_vm2, %v4738_v45  ;;  %6397 = vst [vmem:[#allocation29_spill] sm:$0xff] %v4781_v23  ;;  %v281_v29 = vrot.slane %v4754_v24, 1  ;;  %v282_v45 = vrot.slane %v4757_v40, 1  ;;  %v322_v18 = vrot.slane %v4765_v62, 1  ;;  %v4804_v22 = vsel %vm245_vm1, %v277_v12, %v279_v43  ;;  %p4328_p11 = scmp.ne.s32.totalorder %s3165_s29, %s4327_s6  ;;  %s4333_s13 = scalar_lea.vmem %s4332_s8, 64 }
  0x31   : > { %3876 = vmatprep.mubr.msk.f32.mxu1 %vm328_vm2, %v4746_v50  ;;  %6398 = vst [vmem:[#allocation30_spill] sm:$0xff] %v4790_v44  ;;  %v4795_v52 = vld [vmem:[%s4473_s3 + $0x178] sm:$0x3]  ;;  %6399 = vst [vmem:[#allocation31_spill] sm:$0xff] %v4804_v22  ;;  %v284_v37 = vrot.slane %v4787_v56, 1  ;;  %v915_v50 = vrot.slane %v4476_v3, 2  ;;  %v4811_v62 = vsel %vm245_vm1, %v317_v9, %v319_v36  ;;  %p4334_p0 = scmp.lt.s32.totalorder %s3165_s29, %s4332_s8  ;;  %p4335_p1 = scmp.lt.s32.totalorder %s4333_s13, %s4327_s6 }
  0x32   : > { %6400 = vst [vmem:[#allocation32_spill] sm:$0xff] %v4811_v62  ;;  %v4819_v43 = vsel %vm245_vm1, %v321_v42, %v322_v18  ;;  %v918_v12 = vrot.slane %v4491_v10, 2  ;;  %v920_v10 = vrot.slane %v4499_v14, 2  ;;  %v921_v42 = vrot.slane %v4504_v17, 2  ;;  %p4329_p12 = pnand %p4328_p11, %p4443_p5 }
  0x33   : > { %3853 = vmatmul.mubr.msk.f32.gmra.mxu0 %vm328_vm2, %v4772_v7  ;;  %v4814_v7 = vsel %vm245_vm1, %v281_v29, %v282_v45  ;;  %6402 = vst [vmem:[#allocation34_spill] sm:$0xff] %v4819_v43  ;;  %v4829_v29 = vsel %vm245_vm1, %v282_v45, %v284_v37  ;;  %v923_v37 = vrot.slane %v4526_v26, 2  ;;  %v928_v26 = vrot.slane %v4567_v41, 2  ;;  %p4336_p2 = por %p4335_p1, %p4334_p0 }
  0x34   : > { %3877 = vmatmul.mubr.msk.f32.gmra.mxu1 %vm328_vm2, %v4775_v49  ;;  %3855 = vmatprep.mubr.msk.f32.mxu0 %vm328_vm2, %v4781_v23  ;;  %6401 = vst [vmem:[#allocation33_spill] sm:$0xff] %v4814_v7  ;;  %v324_v49 = vrot.slane %v4795_v52, 1  ;;  %v916_v23 = vrot.slane %v4479_v4, 2  ;;  %6403 = vst [vmem:[#allocation35_spill] sm:$0xff] %v4829_v29  ;;  %v933_v41 = vrot.slane %v4619_v60, 2  ;;  %p4330_p13 = pneg %p4329_p12 }
  0x35   : > { %3879 = vmatprep.mubr.msk.f32.mxu1 %vm328_vm2, %v4790_v44 }
  0x36   : > { %v4834_v36 = vsel %vm245_vm1, %v322_v18, %v324_v49  ;;  %v917_v9 = vsel %vm914_vm3, %v915_v50, %v916_v23  ;;  %v919_v45 = vsel %vm914_vm3, %v916_v23, %v918_v12  ;;  %v925_v49 = vrot.slane %v4546_v33, 2  ;;  %v4870_v23 = vld [vmem:[%s6287_s1 + $0x18] sm:$0xf]  ;;  %p4337_p3 = pnand %p4336_p2, %p4330_p13 }
  0x37   : > { %3856 = vmatmul.mubr.msk.f32.gmra.mxu0 %vm328_vm2, %v4804_v22  ;;  %6404 = vst [vmem:[#allocation36_spill] sm:$0xff] %v4834_v36  ;;  %v926_v50 = vrot.slane %v4549_v34, 2  ;;  %v4852_v18 = vsel %vm914_vm3, %v920_v10, %v921_v42  ;;  %v931_v12 = vrot.slane %v4589_v48, 2 }
  0x38   : > { %3880 = vmatmul.mubr.msk.f32.gmra.mxu1 %vm328_vm2, %v4811_v62  ;;  %3858 = vmatprep.mubr.msk.f32.mxu0 %vm328_vm2, %v4814_v7 }
  0x39   : > { %3882 = vmatprep.mubr.msk.f32.mxu1 %vm328_vm2, %v4819_v43  ;;  %v4911_v60 = vsel %vm914_vm3, %v931_v12, %v933_v41  ;;  %v945_v41 = vrot.slane %v4710_v59, 2 }
  0x3b   : > { %3859 = vmatmul.mubr.msk.f32.gmra.mxu0 %vm328_vm2, %v4829_v29 }
  0x3c   : > { %3883 = vmatmul.mubr.msk.f32.gmra.mxu1 %vm328_vm2, %v4834_v36  ;;  %3937 = vmatprep.mubr.msk.f32.mxu0 %vm328_vm2, %v917_v9  ;;  %v4857_v9 = vld [vmem:[%s6287_s1 + $0x14] sm:$0xf] }
  0x3d   : > { %3887 = vmatprep.mubr.msk.f32.mxu1 %vm328_vm2, %v4476_v3  ;;  %v4864_v3 = vsel %vm914_vm3, %v921_v42, %v923_v37  ;;  %v935_v42 = vrot.slane %v4606_v55, 2  ;;  %v938_v37 = vrot.slane %v4655_v15, 2 }
  0x3f   : > { %3938 = vmatmul.mubr.msk.f32.vlgmr.msra.gmra.mxu0 %vm328_vm2, %v919_v45  ;;  %v936_v45 = vrot.slane %v4622_v61, 2 }
  0x40   : > { %3888 = vmatmul.mubr.msk.f32.vlgmr.msra.gmra.mxu1 %vm328_vm2, %v4479_v4  ;;  %4036 = vmatpush3.msk.msra.mxu0 %vm393_vm0, %v4534_v28  ;;  %v4877_v4 = vsel %vm914_vm3, %v925_v49, %v926_v50  ;;  %v930_v28 = vrot.slane %v4586_v47, 2 }
  0x41   : > { %3986 = vmatpush3.msk.msra.mxu1 %vm393_vm0, %v4516_v21  ;;  %3890 = vmatprep.mubr.msk.f32.mxu1 %vm328_vm2, %v4499_v14  ;;  %v4894_v21 = vsel %vm914_vm3, %v926_v50, %v928_v26  ;;  %v4917_v49 = vsel %vm914_vm3, %v935_v42, %v936_v45  ;;  %v940_v50 = vrot.slane %v4666_v25, 2  ;;  %v941_v26 = vrot.slane %v4669_v30, 2 }
  0x42   : > { %3940 = vmatprep.mubr.msk.f32.mxu0 %vm328_vm2, %v4852_v18  ;;  %4085 = vmatprep.subr.msk.mxu1 %vm393_vm0, %v4857_v9  ;;  %v4900_v10 = vsel %vm914_vm3, %v930_v28, %v931_v12  ;;  %v4928_v15 = vsel %vm914_vm3, %v936_v45, %v938_v37  ;;  %v943_v28 = vrot.slane %v4699_v57, 2  ;;  %v946_v42 = vrot.slane %v4713_v1, 2 }
  0x43   : > { %3941 = vmatmul.mubr.msk.f32.gmra.mxu0 %vm328_vm2, %v4864_v3  ;;  %4135 = vmatprep.subr.msk.mxu0 %vm393_vm0, %v4870_v23  ;;  %6405 = vst [vmem:[#allocation37_spill] sm:$0xff] %v4928_v15  ;;  %v4934_v12 = vsel %vm914_vm3, %v940_v50, %v941_v26  ;;  %v948_v45 = vrot.slane %v4743_v38, 2  ;;  %v950_v50 = vrot.slane %v4754_v24, 2 }
  0x44   : > { %3891 = vmatmul.mubr.msk.f32.gmra.mxu1 %vm328_vm2, %v4504_v17  ;;  %3943 = vmatprep.mubr.msk.f32.mxu0 %vm328_vm2, %v4877_v4  ;;  %v4945_v57 = vsel %vm914_vm3, %v941_v26, %v943_v28  ;;  %v4951_v37 = vsel %vm914_vm3, %v945_v41, %v946_v42  ;;  %v953_v26 = vrot.slane %v4787_v56, 2  ;;  %v955_v41 = vrot.slane %v4482_v5, 2 }
  0x45   : > { %3893 = vmatprep.mubr.msk.f32.mxu1 %vm328_vm2, %v4546_v33  ;;  %6406 = vst [vmem:[#allocation38_spill] sm:$0xff] %v4945_v57  ;;  %v4962_v38 = vsel %vm914_vm3, %v946_v42, %v948_v45  ;;  %v958_v42 = vrot.slane %v4496_v13, 2 }
  0x46   : > { %6407 = vst [vmem:[#allocation39_spill] sm:$0xff] %v4962_v38 }
  0x47   : > { %3944 = vmatmul.mubr.msk.f32.gmra.mxu0 %vm328_vm2, %v4894_v21 }
  0x48   : > { %3894 = vmatmul.mubr.msk.f32.gmra.mxu1 %vm328_vm2, %v4549_v34  ;;  %3946 = vmatprep.mubr.msk.f32.mxu0 %vm328_vm2, %v4900_v10 }
  0x49   : > { %3896 = vmatprep.mubr.msk.f32.mxu1 %vm328_vm2, %v4586_v47 }
  0x4b   : > { %3947 = vmatmul.mubr.msk.f32.gmra.mxu0 %vm328_vm2, %v4911_v60 }
  0x4c   : > { %3897 = vmatmul.mubr.msk.f32.gmra.mxu1 %vm328_vm2, %v4589_v48  ;;  %3949 = vmatprep.mubr.msk.f32.mxu0 %vm328_vm2, %v4917_v49 }
  0x4d   : > { %3899 = vmatprep.mubr.msk.f32.mxu1 %vm328_vm2, %v4606_v55 }
  0x4f   : > { %3950 = vmatmul.mubr.msk.f32.gmra.mxu0 %vm328_vm2, %v4928_v15  ;;  %v951_v15 = vrot.slane %v4757_v40, 2 }
  0x50   : > { %3900 = vmatmul.mubr.msk.f32.gmra.mxu1 %vm328_vm2, %v4622_v61  ;;  %3952 = vmatprep.mubr.msk.f32.mxu0 %vm328_vm2, %v4934_v12 }
  0x51   : > { %3902 = vmatprep.mubr.msk.f32.mxu1 %vm328_vm2, %v4666_v25  ;;  %v4968_v28 = vsel %vm914_vm3, %v950_v50, %v951_v15  ;;  %v4979_v56 = vsel %vm914_vm3, %v951_v15, %v953_v26  ;;  %v960_v50 = vrot.slane %v4508_v19, 2  ;;  %v963_v15 = vrot.slane %v4529_v27, 2 }
  0x52   : > { %6408 = vst [vmem:[#allocation40_spill] sm:$0xff] %v4979_v56 }
  0x53   : > { %3953 = vmatmul.mubr.msk.f32.gmra.mxu0 %vm328_vm2, %v4945_v57  ;;  %v956_v57 = vrot.slane %v4487_v8, 2 }
  0x54   : > { %3903 = vmatmul.mubr.msk.f32.gmra.mxu1 %vm328_vm2, %v4669_v30  ;;  %3955 = vmatprep.mubr.msk.f32.mxu0 %vm328_vm2, %v4951_v37 }
  0x55   : > { %3905 = vmatprep.mubr.msk.f32.mxu1 %vm328_vm2, %v4710_v59  ;;  %v4985_v45 = vsel %vm914_vm3, %v955_v41, %v956_v57  ;;  %v4996_v13 = vsel %vm914_vm3, %v956_v57, %v958_v42  ;;  %v965_v41 = vrot.slane %v4552_v35, 2  ;;  %v968_v57 = vrot.slane %v4583_v46, 2 }
  0x56   : > { %6409 = vst [vmem:[#allocation41_spill] sm:$0xff] %v4996_v13 }
  0x57   : > { %3956 = vmatmul.mubr.msk.f32.gmra.mxu0 %vm328_vm2, %v4962_v38  ;;  %v961_v38 = vrot.slane %v4511_v20, 2 }
  0x58   : > { %3906 = vmatmul.mubr.msk.f32.gmra.mxu1 %vm328_vm2, %v4713_v1  ;;  %3958 = vmatprep.mubr.msk.f32.mxu0 %vm328_vm2, %v4968_v28 }
  0x59   : > { %3908 = vmatprep.mubr.msk.f32.mxu1 %vm328_vm2, %v4754_v24  ;;  %v5002_v26 = vsel %vm914_vm3, %v960_v50, %v961_v38  ;;  %v5013_v27 = vsel %vm914_vm3, %v961_v38, %v963_v15  ;;  %v970_v50 = vrot.slane %v4600_v53, 2  ;;  %v973_v38 = vrot.slane %v4635_v0, 2 }
  0x5a   : > { %6410 = vst [vmem:[#allocation42_spill] sm:$0xff] %v5013_v27 }
  0x5b   : > { %3959 = vmatmul.mubr.msk.f32.gmra.mxu0 %vm328_vm2, %v4979_v56  ;;  %v966_v56 = vrot.slane %v4563_v39, 2 }
  0x5c   : > { %3909 = vmatmul.mubr.msk.f32.gmra.mxu1 %vm328_vm2, %v4757_v40  ;;  %3961 = vmatprep.mubr.msk.f32.mxu0 %vm328_vm2, %v4985_v45 }
  0x5d   : > { %3911 = vmatprep.mubr.msk.f32.mxu1 %vm328_vm2, %v4482_v5  ;;  %v5019_v42 = vsel %vm914_vm3, %v965_v41, %v966_v56  ;;  %v5030_v46 = vsel %vm914_vm3, %v966_v56, %v968_v57  ;;  %v975_v41 = vrot.slane %v4639_v2, 2  ;;  %v978_v56 = vrot.slane %v4658_v16, 2 }
  0x5e   : > { %6411 = vst [vmem:[#allocation43_spill] sm:$0xff] %v5030_v46 }
  0x5f   : > { %3962 = vmatmul.mubr.msk.f32.gmra.mxu0 %vm328_vm2, %v4996_v13  ;;  %v971_v13 = vrot.slane %v4603_v54, 2 }
  0x60   : > { %3912 = vmatmul.mubr.msk.f32.gmra.mxu1 %vm328_vm2, %v4487_v8  ;;  %3964 = vmatprep.mubr.msk.f32.mxu0 %vm328_vm2, %v5002_v26 }
  0x61   : > { %3914 = vmatprep.mubr.msk.f32.mxu1 %vm328_vm2, %v4508_v19  ;;  %v5036_v15 = vsel %vm914_vm3, %v970_v50, %v971_v13  ;;  %v5047_v0 = vsel %vm914_vm3, %v971_v13, %v973_v38  ;;  %v980_v50 = vrot.slane %v4674_v31, 2  ;;  %v983_v13 = vrot.slane %v4702_v58, 2 }
  0x62   : > { %6412 = vst [vmem:[#allocation44_spill] sm:$0xff] %v5036_v15  ;;  %6413 = vst [vmem:[#allocation45_spill] sm:$0xff] %v5047_v0 }
  0x63   : > { %3965 = vmatmul.mubr.msk.f32.gmra.mxu0 %vm328_vm2, %v5013_v27  ;;  %v976_v27 = vrot.slane %v4642_v6, 2 }
  0x64   : > { %3915 = vmatmul.mubr.msk.f32.gmra.mxu1 %vm328_vm2, %v4511_v20  ;;  %3967 = vmatprep.mubr.msk.f32.mxu0 %vm328_vm2, %v5019_v42 }
  0x65   : > { %3917 = vmatprep.mubr.msk.f32.mxu1 %vm328_vm2, %v4552_v35  ;;  %v5053_v57 = vsel %vm914_vm3, %v975_v41, %v976_v27  ;;  %v5064_v16 = vsel %vm914_vm3, %v976_v27, %v978_v56  ;;  %v985_v41 = vrot.slane %v4718_v11, 2  ;;  %v988_v27 = vrot.slane %v4751_v63, 2 }
  0x66   : > { %6414 = vst [vmem:[#allocation46_spill] sm:$0xff] %v5053_v57  ;;  %6415 = vst [vmem:[#allocation47_spill] sm:$0xff] %v5064_v16 }
  0x67   : > { %3968 = vmatmul.mubr.msk.f32.gmra.mxu0 %vm328_vm2, %v5030_v46  ;;  %v981_v46 = vrot.slane %v4677_v32, 2 }
  0x68   : > { %3918 = vmatmul.mubr.msk.f32.gmra.mxu1 %vm328_vm2, %v4563_v39  ;;  %3970 = vmatprep.mubr.msk.f32.mxu0 %vm328_vm2, %v5036_v15 }
  0x69   : > { %3920 = vmatprep.mubr.msk.f32.mxu1 %vm328_vm2, %v4600_v53  ;;  %v5070_v38 = vsel %vm914_vm3, %v980_v50, %v981_v46  ;;  %v5081_v58 = vsel %vm914_vm3, %v981_v46, %v983_v13  ;;  %v990_v50 = vrot.slane %v4762_v51, 2  ;;  %v993_v46 = vrot.slane %v4795_v52, 2  ;;  %v6419_v52 = vld [vmem:[#allocation7_spill] sm:$0xff] }
  0x6b   : > { %3971 = vmatmul.mubr.msk.f32.gmra.mxu0 %vm328_vm2, %v5047_v0  ;;  %v6416_v0 = vld [vmem:[#allocation21_spill] sm:$0xff] }
  0x6c   : > { %3921 = vmatmul.mubr.msk.f32.gmra.mxu1 %vm328_vm2, %v4603_v54  ;;  %3973 = vmatprep.mubr.msk.f32.mxu0 %vm328_vm2, %v5053_v57  ;;  %v986_v15 = vrot.slane %v6416_v0, 2 }
  0x6d   : > { %3923 = vmatprep.mubr.msk.f32.mxu1 %vm328_vm2, %v4639_v2 }
  0x6e   : > { %v5087_v56 = vsel %vm914_vm3, %v985_v41, %v986_v15  ;;  %v5098_v63 = vsel %vm914_vm3, %v986_v15, %v988_v27  ;;  %v6420_v41 = vld [vmem:[#allocation9_spill] sm:$0xff]  ;;  %v5139_v27 = vld [vmem:[%s6287_s1 + $0x20] sm:$0xf] }
  0x6f   : > { %3974 = vmatmul.mubr.msk.f32.gmra.mxu0 %vm328_vm2, %v5064_v16  ;;  %v6417_v16 = vld [vmem:[#allocation26_spill] sm:$0xff] }
  0x70   : > { %3924 = vmatmul.mubr.msk.f32.gmra.mxu1 %vm328_vm2, %v4642_v6  ;;  %3976 = vmatprep.mubr.msk.f32.mxu0 %vm328_vm2, %v5070_v38  ;;  %v991_v57 = vrot.slane %v6417_v16, 2 }
  0x71   : > { %3926 = vmatprep.mubr.msk.f32.mxu1 %vm328_vm2, %v4674_v31 }
  0x72   : > { %v5104_v13 = vsel %vm914_vm3, %v990_v50, %v991_v57  ;;  %v5113_v15 = vsel %vm914_vm3, %v991_v57, %v993_v46  ;;  %v5130_v57 = vld [vmem:[%s6287_s1 + $0x1c] sm:$0xf]  ;;  %v6425_v50 = vld [vmem:[#allocation19_spill] sm:$0xff]  ;;  %v6426_v46 = vld [vmem:[#allocation22_spill] sm:$0xff] }
  0x73   : > { %3977 = vmatmul.mubr.msk.f32.gmra.mxu0 %vm328_vm2, %v5081_v58  ;;  %6418 = vst [vmem:[#allocation21_spill] sm:$0xff] %v5113_v15 }
  0x74   : > { %3927 = vmatmul.mubr.msk.f32.gmra.mxu1 %vm328_vm2, %v4677_v32  ;;  %3979 = vmatprep.mubr.msk.f32.mxu0 %vm328_vm2, %v5087_v56 }
  0x75   : > { %3929 = vmatprep.mubr.msk.f32.mxu1 %vm328_vm2, %v4718_v11 }
  0x77   : > { %3980 = vmatmul.mubr.msk.f32.gmra.mxu0 %vm328_vm2, %v5098_v63 }
  0x78   : > { %3930 = vmatmul.mubr.msk.f32.gmra.mxu1 %vm328_vm2, %v6416_v0  ;;  %3982 = vmatprep.mubr.msk.f32.mxu0 %vm328_vm2, %v5104_v13 }
  0x79   : > { %3932 = vmatprep.mubr.msk.f32.mxu1 %vm328_vm2, %v4762_v51 }
  0x7b   : > { %3983 = vmatmul.mubr.msk.f32.gmra.mxu0 %vm328_vm2, %v5113_v15 }
  0x7c   : > { %3933 = vmatmul.mubr.msk.f32.gmra.mxu1 %vm328_vm2, %v6417_v16  ;;  %4037 = vmatprep.mubr.msk.f32.mxu0 %vm328_vm2, %v6419_v52  ;;  %v6427_v52 = vld [vmem:[#allocation24_spill] sm:$0xff] }
  0x7d   : > { %3987 = vmatprep.mubr.msk.f32.mxu1 %vm328_vm2, %v4499_v14  ;;  %v6421_v14 = vld [vmem:[#allocation11_spill] sm:$0xff] }
  0x7f   : > { %4038 = vmatmul.mubr.msk.f32.vlgmr.msra.gmra.mxu0 %vm328_vm2, %v6420_v41  ;;  %v6428_v41 = vld [vmem:[#allocation27_spill] sm:$0xff] }
  0x80   : > { %3988 = vmatmul.mubr.msk.f32.vlgmr.msra.gmra.mxu1 %vm328_vm2, %v4504_v17  ;;  %4136 = vmatpush3.msk.msra.mxu0 %vm393_vm0, %v4870_v23  ;;  %v6422_v17 = vld [vmem:[#allocation13_spill] sm:$0xff]  ;;  %v6423_v23 = vld [vmem:[#allocation15_spill] sm:$0xff] }
  0x81   : > { %4086 = vmatpush3.msk.msra.mxu1 %vm393_vm0, %v4857_v9  ;;  %3990 = vmatprep.mubr.msk.f32.mxu1 %vm328_vm2, %v4546_v33  ;;  %v6424_v9 = vld [vmem:[#allocation17_spill] sm:$0xff] }
  0x82   : > { %4040 = vmatprep.mubr.msk.f32.mxu0 %vm328_vm2, %v6421_v14  ;;  %4185 = vmatprep.subr.msk.mxu1 %vm393_vm0, %v5130_v57 }
  0x83   : > { %4041 = vmatmul.mubr.msk.f32.gmra.mxu0 %vm328_vm2, %v6422_v17  ;;  %4235 = vmatprep.subr.msk.mxu0 %vm393_vm0, %v5139_v27 }
  0x84   : > { %3991 = vmatmul.mubr.msk.f32.gmra.mxu1 %vm328_vm2, %v4549_v34  ;;  %4043 = vmatprep.mubr.msk.f32.mxu0 %vm328_vm2, %v6423_v23 }
  0x85   : > { %3993 = vmatprep.mubr.msk.f32.mxu1 %vm328_vm2, %v4586_v47 }
  0x87   : > { %4044 = vmatmul.mubr.msk.f32.gmra.mxu0 %vm328_vm2, %v6424_v9 }
  0x88   : > { %3994 = vmatmul.mubr.msk.f32.gmra.mxu1 %vm328_vm2, %v4589_v48  ;;  %4046 = vmatprep.mubr.msk.f32.mxu0 %vm328_vm2, %v6425_v50  ;;  %v6429_v50 = vld [vmem:[#allocation29_spill] sm:$0xff] }
  0x89   : > { %3996 = vmatprep.mubr.msk.f32.mxu1 %vm328_vm2, %v4606_v55 }
  0x8b   : > { %4047 = vmatmul.mubr.msk.f32.gmra.mxu0 %vm328_vm2, %v6426_v46 }
  0x8c   : > { %3997 = vmatmul.mubr.msk.f32.gmra.mxu1 %vm328_vm2, %v4622_v61  ;;  %4049 = vmatprep.mubr.msk.f32.mxu0 %vm328_vm2, %v6427_v52  ;;  %v5256_v52 = vld [vmem:[%s4473_s3 + $0x190] sm:$0x3] }
  0x8d   : > { %3999 = vmatprep.mubr.msk.f32.mxu1 %vm328_vm2, %v4666_v25 }
  0x8f   : > { %4050 = vmatmul.mubr.msk.f32.gmra.mxu0 %vm328_vm2, %v6428_v41  ;;  %v5243_v41 = vld [vmem:[%s4473_s3 + $0x188] sm:$0xff] }
  0x90   : > { %4000 = vmatmul.mubr.msk.f32.gmra.mxu1 %vm328_vm2, %v4669_v30  ;;  %4052 = vmatprep.mubr.msk.f32.mxu0 %vm328_vm2, %v6429_v50  ;;  %v6430_v50 = vld [vmem:[#allocation5_spill] sm:$0xff] }
  0x91   : > { %4002 = vmatprep.mubr.msk.f32.mxu1 %vm328_vm2, %v4710_v59 }
  0x93   : > { %4053 = vmatmul.mubr.msk.f32.gmra.mxu0 %vm328_vm2, %v4804_v22  ;;  %v6431_v22 = vld [vmem:[#allocation6_spill] sm:$0xff] }
  0x94   : > { %4003 = vmatmul.mubr.msk.f32.gmra.mxu1 %vm328_vm2, %v4713_v1  ;;  %4055 = vmatprep.mubr.msk.f32.mxu0 %vm328_vm2, %v4814_v7  ;;  %v6432_v7 = vld [vmem:[#allocation8_spill] sm:$0xff] }
  0x95   : > { %4005 = vmatprep.mubr.msk.f32.mxu1 %vm328_vm2, %v4754_v24 }
  0x97   : > { %4056 = vmatmul.mubr.msk.f32.gmra.mxu0 %vm328_vm2, %v4829_v29  ;;  %v6433_v29 = vld [vmem:[#allocation10_spill] sm:$0xff] }
  0x98   : > { %4006 = vmatmul.mubr.msk.f32.gmra.mxu1 %vm328_vm2, %v4757_v40  ;;  %4058 = vmatprep.mubr.msk.f32.mxu0 %vm328_vm2, %v6430_v50  ;;  %v6434_v50 = vld [vmem:[#allocation12_spill] sm:$0xff] }
  0x99   : > { %4008 = vmatprep.mubr.msk.f32.mxu1 %vm328_vm2, %v4482_v5 }
  0x9b   : > { %4059 = vmatmul.mubr.msk.f32.gmra.mxu0 %vm328_vm2, %v6431_v22  ;;  %v6435_v22 = vld [vmem:[#allocation14_spill] sm:$0xff] }
  0x9c   : > { %4009 = vmatmul.mubr.msk.f32.gmra.mxu1 %vm328_vm2, %v4487_v8  ;;  %4061 = vmatprep.mubr.msk.f32.mxu0 %vm328_vm2, %v6432_v7  ;;  %v6436_v7 = vld [vmem:[#allocation16_spill] sm:$0xff] }
  0x9d   : > { %4011 = vmatprep.mubr.msk.f32.mxu1 %vm328_vm2, %v4508_v19 }
  0x9f   : > { %4062 = vmatmul.mubr.msk.f32.gmra.mxu0 %vm328_vm2, %v6433_v29  ;;  %v6437_v29 = vld [vmem:[#allocation18_spill] sm:$0xff] }
  0xa0   : > { %4012 = vmatmul.mubr.msk.f32.gmra.mxu1 %vm328_vm2, %v4511_v20  ;;  %4064 = vmatprep.mubr.msk.f32.mxu0 %vm328_vm2, %v6434_v50  ;;  %v6438_v50 = vld [vmem:[#allocation20_spill] sm:$0xff] }
  0xa1   : > { %4014 = vmatprep.mubr.msk.f32.mxu1 %vm328_vm2, %v4552_v35 }
  0xa3   : > { %4065 = vmatmul.mubr.msk.f32.gmra.mxu0 %vm328_vm2, %v6435_v22  ;;  %v6439_v22 = vld [vmem:[#allocation23_spill] sm:$0xff] }
  0xa4   : > { %4015 = vmatmul.mubr.msk.f32.gmra.mxu1 %vm328_vm2, %v4563_v39  ;;  %4067 = vmatprep.mubr.msk.f32.mxu0 %vm328_vm2, %v6436_v7  ;;  %v6440_v7 = vld [vmem:[#allocation25_spill] sm:$0xff] }
  0xa5   : > { %4017 = vmatprep.mubr.msk.f32.mxu1 %vm328_vm2, %v4600_v53 }
  0xa7   : > { %4068 = vmatmul.mubr.msk.f32.gmra.mxu0 %vm328_vm2, %v6437_v29  ;;  %v5240_v29 = vld [vmem:[%s4473_s3 + $0x180] sm:$0xff] }
  0xa8   : > { %4018 = vmatmul.mubr.msk.f32.gmra.mxu1 %vm328_vm2, %v4603_v54  ;;  %4070 = vmatprep.mubr.msk.f32.mxu0 %vm328_vm2, %v6438_v50  ;;  %v6441_v50 = vld [vmem:[#allocation28_spill] sm:$0xff] }
  0xa9   : > { %4020 = vmatprep.mubr.msk.f32.mxu1 %vm328_vm2, %v4639_v2 }
  0xab   : > { %4071 = vmatmul.mubr.msk.f32.gmra.mxu0 %vm328_vm2, %v6439_v22  ;;  %v1591_v22 = vrot.slane %v5243_v41, 1 }
  0xac   : > { %4021 = vmatmul.mubr.msk.f32.gmra.mxu1 %vm328_vm2, %v4642_v6  ;;  %4073 = vmatprep.mubr.msk.f32.mxu0 %vm328_vm2, %v6440_v7  ;;  %v1590_v7 = vrot.slane %v5240_v29, 1 }
  0xad   : > { %4023 = vmatprep.mubr.msk.f32.mxu1 %vm328_vm2, %v4674_v31 }
  0xaf   : > { %4074 = vmatmul.mubr.msk.f32.gmra.mxu0 %vm328_vm2, %v6441_v50  ;;  %v5268_v50 = vsel %vm245_vm1, %v1590_v7, %v1591_v22 }
  0xb0   : > { %4024 = vmatmul.mubr.msk.f32.gmra.mxu1 %vm328_vm2, %v4677_v32  ;;  %4076 = vmatprep.mubr.msk.f32.mxu0 %vm328_vm2, %v4790_v44  ;;  %v1593_v44 = vrot.slane %v5256_v52, 1  ;;  %6442 = vst [vmem:[#allocation26_spill] sm:$0xff] %v5268_v50 }
  0xb1   : > { %4026 = vmatprep.mubr.msk.f32.mxu1 %vm328_vm2, %v4718_v11 }
  0xb3   : > { %4077 = vmatmul.mubr.msk.f32.gmra.mxu0 %vm328_vm2, %v4811_v62  ;;  %v5277_v62 = vsel %vm245_vm1, %v1591_v22, %v1593_v44  ;;  %v6454_v22 = vld [vmem:[#allocation47_spill] sm:$0xff] }
  0xb4   : > { %4027 = vmatmul.mubr.msk.f32.gmra.mxu1 %vm328_vm2, %v6416_v0  ;;  %4079 = vmatprep.mubr.msk.f32.mxu0 %vm328_vm2, %v4819_v43  ;;  %6443 = vst [vmem:[#allocation7_spill] sm:$0xff] %v5277_v62 }
  0xb5   : > { %4029 = vmatprep.mubr.msk.f32.mxu1 %vm328_vm2, %v4762_v51 }
  0xb7   : > { %4080 = vmatmul.mubr.msk.f32.gmra.mxu0 %vm328_vm2, %v4834_v36  ;;  %v5454_v36 = vld [vmem:[%s4473_s3 + $0x198] sm:$0xff] }
  0xb8   : > { %4030 = vmatmul.mubr.msk.f32.gmra.mxu1 %vm328_vm2, %v6417_v16  ;;  %4082 = vmatprep.mubr.msk.f32.mxu0 %vm328_vm2, %v5268_v50 }
  0xb9   : > { %4032 = vmatprep.mubr.msk.f32.mxu1 %vm328_vm2, %v5240_v29 }
  0xbb   : > { %4083 = vmatmul.mubr.msk.f32.gmra.mxu0 %vm328_vm2, %v5277_v62 }
  0xbc   : > { %4033 = vmatmul.mubr.msk.f32.gmra.mxu1 %vm328_vm2, %v5243_v41  ;;  %4137 = vmatprep.mubr.msk.f32.mxu0 %vm328_vm2, %v4546_v33  ;;  %v6444_v33 = vld [vmem:[#allocation37_spill] sm:$0xff] }
  0xbd   : > { %4087 = vmatprep.mubr.msk.f32.mxu1 %vm328_vm2, %v4852_v18 }
  0xbf   : > { %4138 = vmatmul.mubr.msk.f32.vlgmr.msra.gmra.mxu0 %vm328_vm2, %v4549_v34  ;;  %v6445_v34 = vld [vmem:[#allocation38_spill] sm:$0xff] }
  0xc0   : > { %4088 = vmatmul.mubr.msk.f32.vlgmr.msra.gmra.mxu1 %vm328_vm2, %v4864_v3  ;;  %4236 = vmatpush3.msk.msra.mxu0 %vm393_vm0, %v5139_v27 }
  0xc1   : > { %4186 = vmatpush3.msk.msra.mxu1 %vm393_vm0, %v5130_v57  ;;  %4090 = vmatprep.mubr.msk.f32.mxu1 %vm328_vm2, %v4877_v4  ;;  %v1861_v57 = vrot.slane %v5240_v29, 2 }
  0xc2   : > { %4140 = vmatprep.mubr.msk.f32.mxu0 %vm328_vm2, %v4586_v47  ;;  %v6446_v47 = vld [vmem:[#allocation39_spill] sm:$0xff] }
  0xc3   : > { %4141 = vmatmul.mubr.msk.f32.gmra.mxu0 %vm328_vm2, %v4589_v48  ;;  %v6447_v48 = vld [vmem:[#allocation40_spill] sm:$0xff] }
  0xc4   : > { %4091 = vmatmul.mubr.msk.f32.gmra.mxu1 %vm328_vm2, %v4894_v21  ;;  %4143 = vmatprep.mubr.msk.f32.mxu0 %vm328_vm2, %v4606_v55  ;;  %v6448_v55 = vld [vmem:[#allocation41_spill] sm:$0xff] }
  0xc5   : > { %4093 = vmatprep.mubr.msk.f32.mxu1 %vm328_vm2, %v4900_v10 }
  0xc7   : > { %4144 = vmatmul.mubr.msk.f32.gmra.mxu0 %vm328_vm2, %v4622_v61 }
  0xc8   : > { %4094 = vmatmul.mubr.msk.f32.gmra.mxu1 %vm328_vm2, %v4911_v60  ;;  %4146 = vmatprep.mubr.msk.f32.mxu0 %vm328_vm2, %v4666_v25  ;;  %v6450_v25 = vld [vmem:[#allocation43_spill] sm:$0xff] }
  0xc9   : > { %4096 = vmatprep.mubr.msk.f32.mxu1 %vm328_vm2, %v4917_v49 }
  0xcb   : > { %4147 = vmatmul.mubr.msk.f32.gmra.mxu0 %vm328_vm2, %v4669_v30  ;;  %v6451_v30 = vld [vmem:[#allocation44_spill] sm:$0xff] }
  0xcc   : > { %4097 = vmatmul.mubr.msk.f32.gmra.mxu1 %vm328_vm2, %v6444_v33  ;;  %4149 = vmatprep.mubr.msk.f32.mxu0 %vm328_vm2, %v4710_v59 }
  0xcd   : > { %4099 = vmatprep.mubr.msk.f32.mxu1 %vm328_vm2, %v4934_v12 }
  0xcf   : > { %4150 = vmatmul.mubr.msk.f32.gmra.mxu0 %vm328_vm2, %v4713_v1 }
  0xd0   : > { %4100 = vmatmul.mubr.msk.f32.gmra.mxu1 %vm328_vm2, %v6445_v34  ;;  %4152 = vmatprep.mubr.msk.f32.mxu0 %vm328_vm2, %v4754_v24  ;;  %v6452_v24 = vld [vmem:[#allocation45_spill] sm:$0xff] }
  0xd1   : > { %4102 = vmatprep.mubr.msk.f32.mxu1 %vm328_vm2, %v4951_v37 }
  0xd3   : > { %4153 = vmatmul.mubr.msk.f32.gmra.mxu0 %vm328_vm2, %v4757_v40  ;;  %v6453_v40 = vld [vmem:[#allocation46_spill] sm:$0xff] }
  0xd4   : > { %4103 = vmatmul.mubr.msk.f32.gmra.mxu1 %vm328_vm2, %v6446_v47  ;;  %4155 = vmatprep.mubr.msk.f32.mxu0 %vm328_vm2, %v4482_v5 }
  0xd5   : > { %4105 = vmatprep.mubr.msk.f32.mxu1 %vm328_vm2, %v4968_v28 }
  0xd7   : > { %4156 = vmatmul.mubr.msk.f32.gmra.mxu0 %vm328_vm2, %v4487_v8 }
  0xd8   : > { %4106 = vmatmul.mubr.msk.f32.gmra.mxu1 %vm328_vm2, %v6447_v48  ;;  %4158 = vmatprep.mubr.msk.f32.mxu0 %vm328_vm2, %v4508_v19  ;;  %v6449_v19 = vld [vmem:[#allocation42_spill] sm:$0xff] }
  0xd9   : > { %4108 = vmatprep.mubr.msk.f32.mxu1 %vm328_vm2, %v4985_v45 }
  0xdb   : > { %4159 = vmatmul.mubr.msk.f32.gmra.mxu0 %vm328_vm2, %v4511_v20 }
  0xdc   : > { %4109 = vmatmul.mubr.msk.f32.gmra.mxu1 %vm328_vm2, %v6448_v55  ;;  %4161 = vmatprep.mubr.msk.f32.mxu0 %vm328_vm2, %v4552_v35 }
  0xdd   : > { %4111 = vmatprep.mubr.msk.f32.mxu1 %vm328_vm2, %v5002_v26 }
  0xdf   : > { %v5357_v5 = vpop.f32.mrf.mxu0  ;;  %4162 = vmatmul.mubr.msk.f32.gmra.mxu0 %vm328_vm2, %v4563_v39 }
  0xe0   : > { %v5361_v8 = vpop.f32.mrf.mxu1  ;;  %4112 = vmatmul.mubr.msk.f32.gmra.mxu1 %vm328_vm2, %v6449_v19  ;;  %4164 = vmatprep.mubr.msk.f32.mxu0 %vm328_vm2, %v4600_v53 }
  0xe1   : > { %v5367_v20 = vpop.f32.mrf.mxu0  ;;  %4114 = vmatprep.mubr.msk.f32.mxu1 %vm328_vm2, %v5019_v42 }
  0xe2   : > { %v5371_v35 = vpop.f32.mrf.mxu1 }
  0xe3   : > { %v5373_v61 = vpop.f32.mrf.mxu0  ;;  %4165 = vmatmul.mubr.msk.f32.gmra.mxu0 %vm328_vm2, %v4603_v54 }
  0xe4   : > { %v5377_v39 = vpop.f32.mrf.mxu1  ;;  %4115 = vmatmul.mubr.msk.f32.gmra.mxu1 %vm328_vm2, %v6450_v25  ;;  %4167 = vmatprep.mubr.msk.f32.mxu0 %vm328_vm2, %v4639_v2 }
  0xe5   : > { %v5383_v53 = vpop.f32.mrf.mxu0  ;;  %4117 = vmatprep.mubr.msk.f32.mxu1 %vm328_vm2, %v6451_v30 }
  0xe6   : > { %v5387_v59 = vpop.f32.mrf.mxu1 }
  0xe7   : > { %v5389_v1 = vpop.f32.mrf.mxu0  ;;  %4168 = vmatmul.mubr.msk.f32.gmra.mxu0 %vm328_vm2, %v4642_v6 }
  0xe8   : > { %v5393_v54 = vpop.f32.mrf.mxu1  ;;  %4118 = vmatmul.mubr.msk.f32.gmra.mxu1 %vm328_vm2, %v6452_v24  ;;  %4170 = vmatprep.mubr.msk.f32.mxu0 %vm328_vm2, %v4674_v31 }
  0xe9   : > { %v5399_v2 = vpop.f32.mrf.mxu0  ;;  %4120 = vmatprep.mubr.msk.f32.mxu1 %vm328_vm2, %v6453_v40 }
  0xea   : > { %v5403_v7 = vpop.f32.mrf.mxu1 }
  0xeb   : > { %v5405_v44 = vpop.f32.mrf.mxu0  ;;  %4171 = vmatmul.mubr.msk.f32.gmra.mxu0 %vm328_vm2, %v4677_v32 }
  0xec   : > { %v5409_v6 = vpop.f32.mrf.mxu1  ;;  %4121 = vmatmul.mubr.msk.f32.gmra.mxu1 %vm328_vm2, %v6454_v22  ;;  %4173 = vmatprep.mubr.msk.f32.mxu0 %vm328_vm2, %v4718_v11 }
  0xed   : > { %v5415_v31 = vpop.f32.mrf.mxu0  ;;  %4123 = vmatprep.mubr.msk.f32.mxu1 %vm328_vm2, %v5070_v38 }
  0xee   : > { %v5419_v18 = vpop.f32.mrf.mxu1 }
  0xef   : > { %v5421_v3 = vpop.f32.mrf.mxu0  ;;  %4174 = vmatmul.mubr.msk.f32.gmra.mxu0 %vm328_vm2, %v6416_v0  ;;  %v1862_v0 = vrot.slane %v5243_v41, 2 }
  0xf0   : > { %v5425_v32 = vpop.f32.mrf.mxu1  ;;  %4124 = vmatmul.mubr.msk.f32.gmra.mxu1 %vm328_vm2, %v5081_v58  ;;  %4176 = vmatprep.mubr.msk.f32.mxu0 %vm328_vm2, %v4762_v51 }
  0xf1   : > { %6455 = vst [vmem:[#allocation9_spill] sm:$0xff] %v5425_v32  ;;  %v5431_v11 = vpop.f32.mrf.mxu0  ;;  %4126 = vmatprep.mubr.msk.f32.mxu1 %vm328_vm2, %v5087_v56  ;;  %v5473_v32 = vld [vmem:[%s4473_s3 + $0x1a0] sm:$0xff] }
  0xf2   : > { %v5436_v27 = vpop.f32.mrf.mxu1 }
  0xf3   : > { %6456 = vst [vmem:[#allocation11_spill] sm:$0xff] %v5436_v27  ;;  %v5439_v62 = vpop.f32.mrf.mxu0  ;;  %4177 = vmatmul.mubr.msk.f32.gmra.mxu0 %vm328_vm2, %v6417_v16  ;;  %v1864_v27 = vrot.slane %v5256_v52, 2  ;;  %v5460_v16 = vsel %vm914_vm3, %v1861_v57, %v1862_v0 }
  0xf4   : > { %v5443_v50 = vpop.f32.mrf.mxu1  ;;  %4127 = vmatmul.mubr.msk.f32.gmra.mxu1 %vm328_vm2, %v5098_v63  ;;  %4179 = vmatprep.mubr.msk.f32.mxu0 %vm328_vm2, %v5240_v29  ;;  %6459 = vst [vmem:[#allocation17_spill] sm:$0xff] %v5460_v16 }
  0xf5   : > { %6457 = vst [vmem:[#allocation13_spill] sm:$0xff] %v5443_v50  ;;  %v5449_v51 = vpop.f32.mrf.mxu0  ;;  %4129 = vmatprep.mubr.msk.f32.mxu1 %vm328_vm2, %v5104_v13  ;;  %v5480_v57 = vsel %vm914_vm3, %v1862_v0, %v1864_v27 }
  0xf6   : > { %v5457_v43 = vpop.f32.mrf.mxu1  ;;  %6461 = vst [vmem:[#allocation37_spill] sm:$0xff] %v5480_v57 }
  0xf7   : > { %6458 = vst [vmem:[#allocation15_spill] sm:$0xff] %v5457_v43  ;;  %v5462_v50 = vpop.f32.mrf.mxu0  ;;  %4180 = vmatmul.mubr.msk.f32.gmra.mxu0 %vm328_vm2, %v5243_v41 }
  0xf8   : > { %v5466_v29 = vpop.f32.mrf.mxu1  ;;  %4130 = vmatmul.mubr.msk.f32.gmra.mxu1 %vm328_vm2, %v5113_v15  ;;  %4182 = vmatprep.mubr.msk.f32.mxu0 %vm328_vm2, %v5454_v36 }
  0xf9   : > { %6460 = vst [vmem:[#allocation22_spill] sm:$0xff] %v5466_v29  ;;  %v5475_v52 = vpop.f32.mrf.mxu0  ;;  %4132 = vmatprep.mubr.msk.f32.mxu1 %vm328_vm2, %v5460_v16 }
  0xfa   : > { %v5482_v43 = vpop.f32.mrf.mxu1 }
  0xfb   : > { %6462 = vst [vmem:[#allocation38_spill] sm:$0xff] %v5482_v43  ;;  %v5484_v41 = vpop.f32.mrf.mxu0  ;;  %4183 = vmatmul.mubr.msk.f32.gmra.mxu0 %vm328_vm2, %v5473_v32 }
  0xfc   : > { %v5488_v29 = vpop.f32.mrf.mxu1  ;;  %4133 = vmatmul.mubr.msk.f32.gmra.mxu1 %vm328_vm2, %v5480_v57  ;;  %4237 = vmatprep.mubr.msk.f32.mxu0 %vm328_vm2, %v4877_v4 }
  0xfd   : > { %6463 = vst [vmem:[#allocation39_spill] sm:$0xff] %v5488_v29  ;;  %v5494_v15 = vpop.f32.mrf.mxu0  ;;  %4187 = vmatprep.mubr.msk.f32.mxu1 %vm328_vm2, %v6421_v14 }
  0xfe   : > { %v5498_v27 = vpop.f32.mrf.mxu1 }
  0xff   : > { %6464 = vst [vmem:[#allocation40_spill] sm:$0xff] %v5498_v27  ;;  %v3939_v0 = vpop.f32.mrf.mxu0  ;;  %4238 = vmatmul.mubr.msk.f32.vlgmr.msra.gmra.mxu0 %vm328_vm2, %v4894_v21 }
 0x100   : > { %v3889_v43 = vpop.f32.mrf.mxu1  ;;  %4188 = vmatmul.mubr.msk.f32.vlgmr.msra.gmra.mxu1 %vm328_vm2, %v6422_v17  ;;  %4240 = vmatprep.mubr.msk.f32.mxu0 %vm328_vm2, %v4900_v10 }
 0x101   : > { %v761_v4 = vadd.f32 %v3889_v43, %v5357_v5  ;;  %v1130_v29 = vpop.f32.mrf.mxu0  ;;  %4190 = vmatprep.mubr.msk.f32.mxu1 %vm328_vm2, %v6423_v23  ;;  %v6465_v23 = vld [vmem:[#allocation19_spill] sm:$0xff] }
 0x102   : > { %v755_v14 = vpop.f32.mrf.mxu1 }
 0x103   : > { %v5509_v57 = vadd.f32 %v3939_v0, %v761_v4  ;;  %v756_v27 = vadd.f32 %v755_v14, %v5367_v20  ;;  %v3942_v16 = vpop.f32.mrf.mxu0  ;;  %4241 = vmatmul.mubr.msk.f32.gmra.mxu0 %vm328_vm2, %v4911_v60  ;;  %v6467_v14 = vld [vmem:[#allocation27_spill] sm:$0xff] }
 0x104   : > { %v3892_v21 = vpop.f32.mrf.mxu1  ;;  %4191 = vmatmul.mubr.msk.f32.gmra.mxu1 %vm328_vm2, %v6424_v9  ;;  %4243 = vmatprep.mubr.msk.f32.mxu0 %vm328_vm2, %v4917_v49 }
 0x105   : > { %v5518_v43 = vadd.f32 %v1130_v29, %v756_v27  ;;  %v771_v10 = vadd.f32 %v3892_v21, %v5373_v61  ;;  %v1140_v17 = vpop.f32.mrf.mxu0  ;;  %4193 = vmatprep.mubr.msk.f32.mxu1 %vm328_vm2, %v6465_v23 }
 0x106   : > { %v765_v5 = vpop.f32.mrf.mxu1 }
 0x107   : > { %v5523_v20 = vadd.f32 %v3942_v16, %v771_v10  ;;  %v766_v60 = vadd.f32 %v765_v5, %v5383_v53  ;;  %v3945_v0 = vpop.f32.mrf.mxu0  ;;  %4244 = vmatmul.mubr.msk.f32.gmra.mxu0 %vm328_vm2, %v6444_v33  ;;  %v6466_v16 = vld [vmem:[#allocation24_spill] sm:$0xff]  ;;  %v6468_v10 = vld [vmem:[#allocation29_spill] sm:$0xff] }
 0x108   : > { %v3895_v9 = vpop.f32.mrf.mxu1  ;;  %4194 = vmatmul.mubr.msk.f32.gmra.mxu1 %vm328_vm2, %v6426_v46  ;;  %4246 = vmatprep.mubr.msk.f32.mxu0 %vm328_vm2, %v4934_v12 }
 0x109   : > { %v5532_v49 = vadd.f32 %v1140_v17, %v766_v60  ;;  %v781_v61 = vadd.f32 %v3895_v9, %v5389_v1  ;;  %v1150_v29 = vpop.f32.mrf.mxu0  ;;  %4196 = vmatprep.mubr.msk.f32.mxu1 %vm328_vm2, %v6466_v16  ;;  %v6469_v60 = vld [vmem:[#allocation31_spill] sm:$0xff]  ;;  %v6470_v9 = vld [vmem:[#allocation33_spill] sm:$0xff] }
 0x10a   : > { %v775_v53 = vpop.f32.mrf.mxu1 }
 0x10b   : > { %v5537_v27 = vadd.f32 %v3945_v0, %v781_v61  ;;  %v776_v33 = vadd.f32 %v775_v53, %v5399_v2  ;;  %v3948_v4 = vpop.f32.mrf.mxu0  ;;  %4247 = vmatmul.mubr.msk.f32.gmra.mxu0 %vm328_vm2, %v6445_v34  ;;  %v6471_v53 = vld [vmem:[#allocation35_spill] sm:$0xff] }
 0x10c   : > { %v3898_v46 = vpop.f32.mrf.mxu1  ;;  %4197 = vmatmul.mubr.msk.f32.gmra.mxu1 %vm328_vm2, %v6467_v14  ;;  %4249 = vmatprep.mubr.msk.f32.mxu0 %vm328_vm2, %v4951_v37 }
 0x10d   : > { %v5546_v12 = vadd.f32 %v1150_v29, %v776_v33  ;;  %v791_v1 = vadd.f32 %v3898_v46, %v5405_v44  ;;  %v1160_v21 = vpop.f32.mrf.mxu0  ;;  %4199 = vmatprep.mubr.msk.f32.mxu1 %vm328_vm2, %v6468_v10 }
 0x10e   : > { %v785_v2 = vpop.f32.mrf.mxu1 }
 0x10f   : > { %v5551_v17 = vadd.f32 %v3948_v4, %v791_v1  ;;  %v786_v34 = vadd.f32 %v785_v2, %v5415_v31  ;;  %v3951_v23 = vpop.f32.mrf.mxu0  ;;  %4250 = vmatmul.mubr.msk.f32.gmra.mxu0 %vm328_vm2, %v6446_v47  ;;  %v6472_v4 = vld [vmem:[#allocation5_spill] sm:$0xff]  ;;  %v6474_v2 = vld [vmem:[#allocation8_spill] sm:$0xff] }
 0x110   : > { %v3901_v5 = vpop.f32.mrf.mxu1  ;;  %4200 = vmatmul.mubr.msk.f32.gmra.mxu1 %vm328_vm2, %v6469_v60  ;;  %4252 = vmatprep.mubr.msk.f32.mxu0 %vm328_vm2, %v4968_v28  ;;  %v6475_v60 = vld [vmem:[#allocation10_spill] sm:$0xff] }
 0x111   : > { %v5560_v37 = vadd.f32 %v1160_v21, %v786_v34  ;;  %v801_v44 = vadd.f32 %v3901_v5, %v5421_v3  ;;  %v1170_v0 = vpop.f32.mrf.mxu0  ;;  %4202 = vmatprep.mubr.msk.f32.mxu1 %vm328_vm2, %v6470_v9  ;;  %v6473_v21 = vld [vmem:[#allocation6_spill] sm:$0xff] }
 0x112   : > { %v795_v31 = vpop.f32.mrf.mxu1 }
 0x113   : > { %v5565_v61 = vadd.f32 %v3951_v23, %v801_v44  ;;  %v796_v47 = vadd.f32 %v795_v31, %v5431_v11  ;;  %v3954_v29 = vpop.f32.mrf.mxu0  ;;  %4253 = vmatmul.mubr.msk.f32.gmra.mxu0 %vm328_vm2, %v6447_v48 }
 0x114   : > { %v3904_v16 = vpop.f32.mrf.mxu1  ;;  %4203 = vmatmul.mubr.msk.f32.gmra.mxu1 %vm328_vm2, %v6471_v53  ;;  %4255 = vmatprep.mubr.msk.f32.mxu0 %vm328_vm2, %v4985_v45  ;;  %v6478_v53 = vld [vmem:[#allocation16_spill] sm:$0xff] }
 0x115   : > { %v5574_v28 = vadd.f32 %v1170_v0, %v796_v47  ;;  %v811_v3 = vadd.f32 %v3904_v16, %v5439_v62  ;;  %v1180_v33 = vpop.f32.mrf.mxu0  ;;  %4205 = vmatprep.mubr.msk.f32.mxu1 %vm328_vm2, %v6472_v4  ;;  %v6476_v0 = vld [vmem:[#allocation12_spill] sm:$0xff] }
 0x116   : > { %v805_v11 = vpop.f32.mrf.mxu1 }
 0x117   : > { %v5579_v46 = vadd.f32 %v3954_v29, %v811_v3  ;;  %v806_v48 = vadd.f32 %v805_v11, %v5449_v51  ;;  %v3957_v14 = vpop.f32.mrf.mxu0  ;;  %4256 = vmatmul.mubr.msk.f32.gmra.mxu0 %vm328_vm2, %v6448_v55  ;;  %v6477_v29 = vld [vmem:[#allocation14_spill] sm:$0xff] }
 0x118   : > { %v3907_v1 = vpop.f32.mrf.mxu1  ;;  %4206 = vmatmul.mubr.msk.f32.gmra.mxu1 %vm328_vm2, %v6473_v21  ;;  %4258 = vmatprep.mubr.msk.f32.mxu0 %vm328_vm2, %v5002_v26  ;;  %v6479_v11 = vld [vmem:[#allocation18_spill] sm:$0xff] }
 0x119   : > { %v5588_v62 = vadd.f32 %v1180_v33, %v806_v48  ;;  %v821_v45 = vadd.f32 %v3907_v1, %v5462_v50  ;;  %v1190_v10 = vpop.f32.mrf.mxu0  ;;  %4208 = vmatprep.mubr.msk.f32.mxu1 %vm328_vm2, %v6474_v2 }
 0x11a   : > { %v815_v51 = vpop.f32.mrf.mxu1 }
 0x11b   : > { %v5593_v34 = vadd.f32 %v3957_v14, %v821_v45  ;;  %v816_v55 = vadd.f32 %v815_v51, %v5475_v52  ;;  %v3960_v23 = vpop.f32.mrf.mxu0  ;;  %4259 = vmatmul.mubr.msk.f32.gmra.mxu0 %vm328_vm2, %v6449_v19  ;;  %v6480_v14 = vld [vmem:[#allocation20_spill] sm:$0xff]  ;;  %v6482_v51 = vld [vmem:[#allocation25_spill] sm:$0xff] }
 0x11c   : > { %v3910_v5 = vpop.f32.mrf.mxu1  ;;  %4209 = vmatmul.mubr.msk.f32.gmra.mxu1 %vm328_vm2, %v6475_v60  ;;  %4261 = vmatprep.mubr.msk.f32.mxu0 %vm328_vm2, %v5019_v42  ;;  %v6483_v60 = vld [vmem:[#allocation28_spill] sm:$0xff] }
 0x11d   : > { %v5602_v26 = vadd.f32 %v1190_v10, %v816_v55  ;;  %v831_v50 = vadd.f32 %v3910_v5, %v5484_v41  ;;  %v1200_v44 = vpop.f32.mrf.mxu0  ;;  %4211 = vmatprep.mubr.msk.f32.mxu1 %vm328_vm2, %v6476_v0  ;;  %v6481_v10 = vld [vmem:[#allocation23_spill] sm:$0xff] }
 0x11e   : > { %v825_v52 = vpop.f32.mrf.mxu1 }
 0x11f   : > { %v5607_v9 = vadd.f32 %v3960_v23, %v831_v50  ;;  %v826_v19 = vadd.f32 %v825_v52, %v5494_v15  ;;  %v3963_v31 = vpop.f32.mrf.mxu0  ;;  %4262 = vmatmul.mubr.msk.f32.gmra.mxu0 %vm328_vm2, %v6450_v25 }
 0x120   : > { %v3913_v47 = vpop.f32.mrf.mxu1  ;;  %4212 = vmatmul.mubr.msk.f32.gmra.mxu1 %vm328_vm2, %v6477_v29  ;;  %4264 = vmatprep.mubr.msk.f32.mxu0 %vm328_vm2, %v6451_v30  ;;  %v6486_v29 = vld [vmem:[#allocation9_spill] sm:$0xff] }
 0x121   : > { %v5616_v42 = vadd.f32 %v1200_v44, %v826_v19  ;;  %v841_v41 = vadd.f32 %v3913_v47, %v5361_v8  ;;  %v1210_v16 = vpop.f32.mrf.mxu0  ;;  %4214 = vmatprep.mubr.msk.f32.mxu1 %vm328_vm2, %v6478_v53  ;;  %v6484_v44 = vld [vmem:[#allocation30_spill] sm:$0xff]  ;;  %v2401_v53 = vrot.slane %v5454_v36, 1 }
 0x122   : > { %v835_v15 = vpop.f32.mrf.mxu1 }
 0x123   : > { %v5621_v3 = vadd.f32 %v3963_v31, %v841_v41  ;;  %v836_v25 = vadd.f32 %v835_v15, %v5371_v35  ;;  %v3966_v33 = vpop.f32.mrf.mxu0  ;;  %4265 = vmatmul.mubr.msk.f32.gmra.mxu0 %vm328_vm2, %v6452_v24  ;;  %v2673_v31 = vrot.slane %v5473_v32, 2  ;;  %v2402_v15 = vrot.slane %v5473_v32, 1  ;;  %v6492_v32 = vld [vmem:[#allocation13_spill] sm:$0xff] }
 0x124   : > { %v3916_v4 = vpop.f32.mrf.mxu1  ;;  %4215 = vmatmul.mubr.msk.f32.gmra.mxu1 %vm328_vm2, %v6479_v11  ;;  %4267 = vmatprep.mubr.msk.f32.mxu0 %vm328_vm2, %v6453_v40 }
 0x125   : > { %v5630_v8 = vadd.f32 %v1210_v16, %v836_v25  ;;  %v851_v30 = vadd.f32 %v3916_v4, %v5377_v39  ;;  %v1220_v48 = vpop.f32.mrf.mxu0  ;;  %4217 = vmatprep.mubr.msk.f32.mxu1 %vm328_vm2, %v6480_v14  ;;  %v6487_v16 = vld [vmem:[#allocation34_spill] sm:$0xff]  ;;  %v6490_v14 = vld [vmem:[#allocation36_spill] sm:$0xff] }
 0x126   : > { %v845_v35 = vpop.f32.mrf.mxu1 }
 0x127   : > { %v5635_v1 = vadd.f32 %v3966_v33, %v851_v30  ;;  %v846_v24 = vadd.f32 %v845_v35, %v5387_v59  ;;  %v3969_v21 = vpop.f32.mrf.mxu0  ;;  %4268 = vmatmul.mubr.msk.f32.gmra.mxu0 %vm328_vm2, %v6454_v22  ;;  %v6489_v30 = vld [vmem:[#allocation21_spill] sm:$0xff] }
 0x128   : > { %v3919_v45 = vpop.f32.mrf.mxu1  ;;  %4218 = vmatmul.mubr.msk.f32.gmra.mxu1 %vm328_vm2, %v6481_v10  ;;  %4270 = vmatprep.mubr.msk.f32.mxu0 %vm328_vm2, %v5070_v38  ;;  %v6491_v35 = vld [vmem:[#allocation17_spill] sm:$0xff]  ;;  %v6493_v10 = vld [vmem:[#allocation26_spill] sm:$0xff] }
 0x129   : > { %v5644_v39 = vadd.f32 %v1220_v48, %v846_v24  ;;  %v861_v40 = vadd.f32 %v3919_v45, %v5393_v54  ;;  %v1230_v2 = vpop.f32.mrf.mxu0  ;;  %4220 = vmatprep.mubr.msk.f32.mxu1 %vm328_vm2, %v6482_v51 }
 0x12a   : > { %v855_v59 = vpop.f32.mrf.mxu1 }
 0x12b   : > { %v5649_v55 = vadd.f32 %v3969_v21, %v861_v40  ;;  %v856_v22 = vadd.f32 %v855_v59, %v5403_v7  ;;  %v3972_v23 = vpop.f32.mrf.mxu0  ;;  %4271 = vmatmul.mubr.msk.f32.gmra.mxu0 %vm328_vm2, %v5081_v58  ;;  %v2403_v59 = vsel %vm245_vm1, %v2401_v53, %v2402_v15 }
 0x12c   : > { %v3922_v5 = vpop.f32.mrf.mxu1  ;;  %4221 = vmatmul.mubr.msk.f32.gmra.mxu1 %vm328_vm2, %v6483_v60  ;;  %4273 = vmatprep.mubr.msk.f32.mxu0 %vm328_vm2, %v5087_v56  ;;  %v6485_v56 = vld [vmem:[#allocation32_spill] sm:$0xff] }
 0x12d   : > { %v5658_v38 = vadd.f32 %v1230_v2, %v856_v22  ;;  %v871_v54 = vadd.f32 %v3922_v5, %v5409_v6  ;;  %v1240_v50 = vpop.f32.mrf.mxu0  ;;  %4223 = vmatprep.mubr.msk.f32.mxu1 %vm328_vm2, %v6484_v44  ;;  %v2672_v6 = vrot.slane %v5454_v36, 2  ;;  %v6496_v44 = vld [vmem:[#allocation7_spill] sm:$0xff] }
 0x12e   : > { %v865_v7 = vpop.f32.mrf.mxu1 }
 0x12f   : > { %v5663_v0 = vadd.f32 %v3972_v23, %v871_v54  ;;  %v866_v58 = vadd.f32 %v865_v7, %v5419_v18  ;;  %v3975_v52 = vpop.f32.mrf.mxu0  ;;  %4274 = vmatmul.mubr.msk.f32.gmra.mxu0 %vm328_vm2, %v5098_v63  ;;  %v195_v63 = vld [vmem:[%s4473_s3 + $0x1a8] sm:$0x3]  ;;  %v2674_v40 = vsel %vm914_vm3, %v2672_v6, %v2673_v31  ;;  %v6494_v23 = vld [vmem:[#allocation15_spill] sm:$0xff] }
 0x130   : > { %v3925_v19 = vpop.f32.mrf.mxu1  ;;  %4224 = vmatmul.mubr.msk.f32.gmra.mxu1 %vm328_vm2, %v6485_v56  ;;  %4276 = vmatprep.mubr.msk.f32.mxu0 %vm328_vm2, %v5104_v13  ;;  %v6488_v13 = vld [vmem:[#allocation11_spill] sm:$0xff]  ;;  %v2675_v24 = vrot.slane %v195_v63, 2  ;;  %v2404_v2 = vrot.slane %v195_v63, 1  ;;  %v6495_v54 = vld [vmem:[#allocation37_spill] sm:$0xff] }
 0x131   : > { %v5674_v47 = vadd.f32 %v1240_v50, %v866_v58  ;;  %v881_v41 = vadd.f32 %v3925_v19, %v6486_v29  ;;  %v1250_v18 = vpop.f32.mrf.mxu0  ;;  %4226 = vmatprep.mubr.msk.f32.mxu1 %vm328_vm2, %v6487_v16 }
 0x132   : > { %v875_v25 = vpop.f32.mrf.mxu1  ;;  %v2676_v7 = vsel %vm914_vm3, %v2673_v31, %v2675_v24  ;;  %v2405_v6 = vsel %vm245_vm1, %v2402_v15, %v2404_v2  ;;  %v6500_v15 = vld [vmem:[#allocation40_spill] sm:$0xff] }
 0x133   : > { %v5682_v33 = vadd.f32 %v3975_v52, %v881_v41  ;;  %v876_v4 = vadd.f32 %v875_v25, %v6488_v13  ;;  %v3978_v11 = vpop.f32.mrf.mxu0  ;;  %4277 = vmatmul.mubr.msk.f32.gmra.mxu0 %vm328_vm2, %v6489_v30  ;;  %v6497_v52 = vld [vmem:[#allocation22_spill] sm:$0xff]  ;;  %v6499_v25 = vld [vmem:[#allocation39_spill] sm:$0xff] }
 0x134   : > { %v3928_v48 = vpop.f32.mrf.mxu1  ;;  %4227 = vmatmul.mubr.msk.f32.gmra.mxu1 %vm328_vm2, %v6490_v14  ;;  %4279 = vmatprep.mubr.msk.f32.mxu0 %vm328_vm2, %v6491_v35 }
 0x135   : > { %v5691_v36 = vadd.f32 %v1250_v18, %v876_v4  ;;  %v891_v21 = vadd.f32 %v3928_v48, %v6492_v32  ;;  %v1260_v45 = vpop.f32.mrf.mxu0  ;;  %4229 = vmatprep.mubr.msk.f32.mxu1 %vm328_vm2, %v6493_v10  ;;  %v6498_v18 = vld [vmem:[#allocation38_spill] sm:$0xff] }
 0x136   : > { %v885_v51 = vpop.f32.mrf.mxu1 }
 0x137   : > { %v5698_v22 = vadd.f32 %v3978_v11, %v891_v21  ;;  %v886_v5 = vadd.f32 %v885_v51, %v6494_v23  ;;  %v3981_v60 = vpop.f32.mrf.mxu0  ;;  %4280 = vmatmul.mubr.msk.f32.gmra.mxu0 %vm328_vm2, %v6495_v54 }
 0x138   : > { %v3931_v50 = vpop.f32.mrf.mxu1  ;;  %4230 = vmatmul.mubr.msk.f32.gmra.mxu1 %vm328_vm2, %v6496_v44  ;;  %4282 = vmatprep.mubr.msk.f32.mxu0 %vm328_vm2, %v2674_v40 }
 0x139   : > { %v5707_v58 = vadd.f32 %v1260_v45, %v886_v5  ;;  %v901_v19 = vadd.f32 %v3931_v50, %v6497_v52  ;;  %v1270_v56 = vpop.f32.mrf.mxu0  ;;  %4232 = vmatprep.mubr.msk.f32.mxu1 %vm328_vm2, %v2403_v59 }
 0x13a   : > { %v895_v29 = vpop.f32.mrf.mxu1 }
 0x13b   : > { %v5712_v41 = vadd.f32 %v3981_v60, %v901_v19  ;;  %v896_v16 = vadd.f32 %v895_v29, %v6498_v18  ;;  %v3984_v63 = vpop.f32.mrf.mxu0  ;;  %4283 = vmatmul.mubr.msk.f32.gmra.mxu0 %vm328_vm2, %v2676_v7 }
 0x13c   : > { %v3934_v53 = vpop.f32.mrf.mxu1  ;;  %4233 = vmatmul.mubr.msk.f32.gmra.mxu1 %vm328_vm2, %v2405_v6 }
 0x13d   : > { %v5717_v31 = vadd.f32 %v1270_v56, %v896_v16  ;;  %v911_v13 = vadd.f32 %v3934_v53, %v6499_v25  ;;  %v1280_v4 = vpop.f32.mrf.mxu0 }
 0x13e   : > { %v905_v11 = vpop.f32.mrf.mxu1 }
 0x13f   : > { %v5720_v30 = vadd.f32 %v3984_v63, %v911_v13  ;;  %v906_v48 = vadd.f32 %v905_v11, %v6500_v15  ;;  %v4039_v14 = vpop.f32.mrf.mxu0 }
 0x140   : > { %v3989_v35 = vpop.f32.mrf.mxu1 }
 0x141   : > { %v5723_v24 = vadd.f32 %v1280_v4, %v906_v48  ;;  %v1558_v32 = vadd.f32 %v3989_v35, %v5509_v57  ;;  %v1670_v21 = vpop.f32.mrf.mxu0 }
 0x142   : > { %v1398_v45 = vpop.f32.mrf.mxu1 }
 0x143   : > { %v5726_v10 = vadd.f32 %v4039_v14, %v1558_v32  ;;  %v1557_v40 = vadd.f32 %v1398_v45, %v5518_v43  ;;  %v4042_v2 = vpop.f32.mrf.mxu0 }
 0x144   : > { %v3992_v51 = vpop.f32.mrf.mxu1 }
 0x145   : > { %v5729_v59 = vadd.f32 %v1670_v21, %v1557_v40  ;;  %v1560_v23 = vadd.f32 %v3992_v51, %v5523_v20  ;;  %v1680_v5 = vpop.f32.mrf.mxu0 }
 0x146   : > { %v1408_v60 = vpop.f32.mrf.mxu1 }
 0x147   : > { %v5732_v54 = vadd.f32 %v4042_v2, %v1560_v23  ;;  %v1559_v50 = vadd.f32 %v1408_v60, %v5532_v49  ;;  %v4045_v44 = vpop.f32.mrf.mxu0 }
 0x148   : > { %v3995_v57 = vpop.f32.mrf.mxu1 }
 0x149   : > { %v5735_v7 = vadd.f32 %v1680_v5, %v1559_v50  ;;  %v1562_v52 = vadd.f32 %v3995_v57, %v5537_v27  ;;  %v1690_v19 = vpop.f32.mrf.mxu0 }
 0x14a   : > { %v1418_v43 = vpop.f32.mrf.mxu1 }
 0x14b   : > { %v5738_v56 = vadd.f32 %v4045_v44, %v1562_v52  ;;  %v1561_v6 = vadd.f32 %v1418_v43, %v5546_v12  ;;  %v4048_v29 = vpop.f32.mrf.mxu0 }
 0x14c   : > { %v3998_v20 = vpop.f32.mrf.mxu1 }
 0x14d   : > { %v5741_v18 = vadd.f32 %v1690_v19, %v1561_v6  ;;  %v1564_v16 = vadd.f32 %v3998_v20, %v5551_v17  ;;  %v1700_v63 = vpop.f32.mrf.mxu0 }
 0x14e   : > { %v1428_v49 = vpop.f32.mrf.mxu1 }
 0x14f   : > { %v5744_v53 = vadd.f32 %v4048_v29, %v1564_v16  ;;  %v1563_v25 = vadd.f32 %v1428_v49, %v5560_v37  ;;  %v4051_v13 = vpop.f32.mrf.mxu0 }
 0x150   : > { %v4001_v27 = vpop.f32.mrf.mxu1 }
 0x151   : > { %v5747_v4 = vadd.f32 %v1700_v63, %v1563_v25  ;;  %v1566_v11 = vadd.f32 %v4001_v27, %v5565_v61  ;;  %v1710_v15 = vpop.f32.mrf.mxu0 }
 0x152   : > { %v1438_v12 = vpop.f32.mrf.mxu1 }
 0x153   : > { %v5750_v48 = vadd.f32 %v4051_v13, %v1566_v11  ;;  %v1565_v14 = vadd.f32 %v1438_v12, %v5574_v28  ;;  %v4054_v35 = vpop.f32.mrf.mxu0 }
 0x154   : > { %v4004_v17 = vpop.f32.mrf.mxu1 }
 0x155   : > { %v5753_v32 = vadd.f32 %v1710_v15, %v1565_v14  ;;  %v1568_v21 = vadd.f32 %v4004_v17, %v5579_v46  ;;  %v1720_v45 = vpop.f32.mrf.mxu0 }
 0x156   : > { %v1448_v37 = vpop.f32.mrf.mxu1 }
 0x157   : > { %v5756_v40 = vadd.f32 %v4054_v35, %v1568_v21  ;;  %v1567_v2 = vadd.f32 %v1448_v37, %v5588_v62  ;;  %v4057_v51 = vpop.f32.mrf.mxu0 }
 0x158   : > { %v4007_v61 = vpop.f32.mrf.mxu1 }
 0x159   : > { %v5759_v23 = vadd.f32 %v1720_v45, %v1567_v2  ;;  %v1570_v5 = vadd.f32 %v4007_v61, %v5593_v34  ;;  %v1730_v60 = vpop.f32.mrf.mxu0 }
 0x15a   : > { %v1458_v28 = vpop.f32.mrf.mxu1 }
 0x15b   : > { %v5762_v50 = vadd.f32 %v4057_v51, %v1570_v5  ;;  %v1569_v44 = vadd.f32 %v1458_v28, %v5602_v26  ;;  %v4060_v57 = vpop.f32.mrf.mxu0 }
 0x15c   : > { %v4010_v46 = vpop.f32.mrf.mxu1 }
 0x15d   : > { %v5765_v52 = vadd.f32 %v1730_v60, %v1569_v44  ;;  %v1572_v19 = vadd.f32 %v4010_v46, %v5607_v9  ;;  %v1740_v43 = vpop.f32.mrf.mxu0 }
 0x15e   : > { %v1468_v62 = vpop.f32.mrf.mxu1 }
 0x15f   : > { %v5768_v6 = vadd.f32 %v4060_v57, %v1572_v19  ;;  %v1571_v29 = vadd.f32 %v1468_v62, %v5616_v42  ;;  %v4063_v20 = vpop.f32.mrf.mxu0 }
 0x160   : > { %v4013_v34 = vpop.f32.mrf.mxu1 }
 0x161   : > { %v5771_v16 = vadd.f32 %v1740_v43, %v1571_v29  ;;  %v1574_v63 = vadd.f32 %v4013_v34, %v5621_v3  ;;  %v1750_v49 = vpop.f32.mrf.mxu0 }
 0x162   : > { %v1478_v26 = vpop.f32.mrf.mxu1 }
 0x163   : > { %v5774_v25 = vadd.f32 %v4063_v20, %v1574_v63  ;;  %v1573_v13 = vadd.f32 %v1478_v26, %v5630_v8  ;;  %v4066_v27 = vpop.f32.mrf.mxu0 }
 0x164   : > { %v4016_v9 = vpop.f32.mrf.mxu1 }
 0x165   : > { %v5777_v11 = vadd.f32 %v1750_v49, %v1573_v13  ;;  %v1576_v15 = vadd.f32 %v4016_v9, %v5635_v1  ;;  %v1760_v12 = vpop.f32.mrf.mxu0 }
 0x166   : > { %v1488_v42 = vpop.f32.mrf.mxu1 }
 0x167   : > { %v5780_v14 = vadd.f32 %v4066_v27, %v1576_v15  ;;  %v1575_v35 = vadd.f32 %v1488_v42, %v5644_v39  ;;  %v4069_v17 = vpop.f32.mrf.mxu0 }
 0x168   : > { %v4019_v3 = vpop.f32.mrf.mxu1 }
 0x169   : > { %v5783_v21 = vadd.f32 %v1760_v12, %v1575_v35  ;;  %v1578_v45 = vadd.f32 %v4019_v3, %v5649_v55  ;;  %v1770_v37 = vpop.f32.mrf.mxu0 }
 0x16a   : > { %v1498_v8 = vpop.f32.mrf.mxu1 }
 0x16b   : > { %v5786_v2 = vadd.f32 %v4069_v17, %v1578_v45  ;;  %v1577_v51 = vadd.f32 %v1498_v8, %v5658_v38  ;;  %v4072_v61 = vpop.f32.mrf.mxu0 }
 0x16c   : > { %v4022_v1 = vpop.f32.mrf.mxu1 }
 0x16d   : > { %v5789_v5 = vadd.f32 %v1770_v37, %v1577_v51  ;;  %v1580_v60 = vadd.f32 %v4022_v1, %v5663_v0  ;;  %v1780_v28 = vpop.f32.mrf.mxu0 }
 0x16e   : > { %v1508_v39 = vpop.f32.mrf.mxu1 }
 0x16f   : > { %v5792_v44 = vadd.f32 %v4072_v61, %v1580_v60  ;;  %v1579_v57 = vadd.f32 %v1508_v39, %v5674_v47  ;;  %v4075_v46 = vpop.f32.mrf.mxu0 }
 0x170   : > { %v4025_v55 = vpop.f32.mrf.mxu1 }
 0x171   : > { %v5795_v19 = vadd.f32 %v1780_v28, %v1579_v57  ;;  %v1582_v43 = vadd.f32 %v4025_v55, %v5682_v33  ;;  %v1790_v62 = vpop.f32.mrf.mxu0 }
 0x172   : > { %v1518_v38 = vpop.f32.mrf.mxu1 }
 0x173   : > { %v5798_v29 = vadd.f32 %v4075_v46, %v1582_v43  ;;  %v1581_v20 = vadd.f32 %v1518_v38, %v5691_v36  ;;  %v4078_v34 = vpop.f32.mrf.mxu0 }
 0x174   : > { %v4028_v0 = vpop.f32.mrf.mxu1 }
 0x175   : > { %v5801_v63 = vadd.f32 %v1790_v62, %v1581_v20  ;;  %v1584_v49 = vadd.f32 %v4028_v0, %v5698_v22  ;;  %v1800_v26 = vpop.f32.mrf.mxu0 }
 0x176   : > { %v1528_v47 = vpop.f32.mrf.mxu1 }
 0x177   : > { %6501 = vst [vmem:[#allocation41_spill] sm:$0xff] %v5801_v63  ;;  %v5804_v13 = vadd.f32 %v4078_v34, %v1584_v49  ;;  %v1583_v27 = vadd.f32 %v1528_v47, %v5707_v58  ;;  %v4081_v9 = vpop.f32.mrf.mxu0 }
 0x178   : > { %v4031_v33 = vpop.f32.mrf.mxu1 }
 0x179   : > { %v5807_v15 = vadd.f32 %v1800_v26, %v1583_v27  ;;  %v1586_v12 = vadd.f32 %v4031_v33, %v5712_v41  ;;  %v1810_v42 = vpop.f32.mrf.mxu0 }
 0x17a   : > { %v1538_v36 = vpop.f32.mrf.mxu1 }
 0x17b   : > { %6502 = vst [vmem:[#allocation42_spill] sm:$0xff] %v5807_v15  ;;  %v5810_v35 = vadd.f32 %v4081_v9, %v1586_v12  ;;  %v1585_v17 = vadd.f32 %v1538_v36, %v5717_v31  ;;  %v4084_v3 = vpop.f32.mrf.mxu0 }
 0x17c   : > { %v4034_v22 = vpop.f32.mrf.mxu1 }
 0x17d   : > { %v5813_v45 = vadd.f32 %v1810_v42, %v1585_v17  ;;  %v1588_v37 = vadd.f32 %v4034_v22, %v5720_v30  ;;  %v1820_v8 = vpop.f32.mrf.mxu0 }
 0x17e   : > { %v1548_v58 = vpop.f32.mrf.mxu1 }
 0x17f   : > { %6503 = vst [vmem:[#allocation43_spill] sm:$0xff] %v5813_v45  ;;  %v5816_v51 = vadd.f32 %v4084_v3, %v1588_v37  ;;  %v1587_v61 = vadd.f32 %v1548_v58, %v5723_v24  ;;  %v4139_v1 = vpop.f32.mrf.mxu0 }
 0x180   : > { %v4089_v41 = vpop.f32.mrf.mxu1 }
 0x181   : > { %v5819_v60 = vadd.f32 %v1820_v8, %v1587_v61  ;;  %v2101_v28 = vadd.f32 %v4089_v41, %v5726_v10  ;;  %v5822_v39 = vpop.f32.mrf.mxu0 }
 0x182   : > { %v5824_v31 = vpop.f32.mrf.mxu1 }
 0x183   : > { %6504 = vst [vmem:[#allocation44_spill] sm:$0xff] %v5819_v60  ;;  %v5826_v57 = vadd.f32 %v4139_v1, %v2101_v28  ;;  %v4142_v46 = vpop.f32.mrf.mxu0 }
 0x184   : > { %v4092_v30 = vpop.f32.mrf.mxu1 }
 0x185   : > { %v2103_v55 = vadd.f32 %v4092_v30, %v5732_v54  ;;  %v5829_v43 = vpop.f32.mrf.mxu0 }
 0x186   : > { %v5831_v62 = vpop.f32.mrf.mxu1 }
 0x187   : > { %v5833_v24 = vadd.f32 %v4142_v46, %v2103_v55  ;;  %v4145_v38 = vpop.f32.mrf.mxu0 }
 0x188   : > { %v4095_v20 = vpop.f32.mrf.mxu1 }
 0x189   : > { %v2105_v10 = vadd.f32 %v4095_v20, %v5738_v56  ;;  %v5836_v34 = vpop.f32.mrf.mxu0 }
 0x18a   : > { %v5838_v0 = vpop.f32.mrf.mxu1 }
 0x18b   : > { %v5840_v49 = vadd.f32 %v4145_v38, %v2105_v10  ;;  %v4148_v26 = vpop.f32.mrf.mxu0 }
 0x18c   : > { %v4098_v47 = vpop.f32.mrf.mxu1 }
 0x18d   : > { %v2107_v54 = vadd.f32 %v4098_v47, %v5744_v53  ;;  %v5843_v27 = vpop.f32.mrf.mxu0 }
 0x18e   : > { %v5845_v9 = vpop.f32.mrf.mxu1 }
 0x18f   : > { %v5847_v33 = vadd.f32 %v4148_v26, %v2107_v54  ;;  %v4151_v12 = vpop.f32.mrf.mxu0 }
 0x190   : > { %v4101_v42 = vpop.f32.mrf.mxu1 }
 0x191   : > { %v2109_v56 = vadd.f32 %v4101_v42, %v5750_v48  ;;  %v5850_v36 = vpop.f32.mrf.mxu0 }
 0x192   : > { %v5852_v17 = vpop.f32.mrf.mxu1 }
 0x193   : > { %v5854_v3 = vadd.f32 %v4151_v12, %v2109_v56  ;;  %v4154_v22 = vpop.f32.mrf.mxu0 }
 0x194   : > { %v4104_v37 = vpop.f32.mrf.mxu1 }
 0x195   : > { %v2111_v53 = vadd.f32 %v4104_v37, %v5756_v40  ;;  %v5857_v8 = vpop.f32.mrf.mxu0 }
 0x196   : > { %v5859_v58 = vpop.f32.mrf.mxu1 }
 0x197   : > { %v5861_v61 = vadd.f32 %v4154_v22, %v2111_v53  ;;  %v4157_v1 = vpop.f32.mrf.mxu0 }
 0x198   : > { %v4107_v41 = vpop.f32.mrf.mxu1 }
 0x199   : > { %v2113_v48 = vadd.f32 %v4107_v41, %v5762_v50  ;;  %v5864_v28 = vpop.f32.mrf.mxu0 }
 0x19a   : > { %v5866_v46 = vpop.f32.mrf.mxu1 }
 0x19b   : > { %v5868_v30 = vadd.f32 %v4157_v1, %v2113_v48  ;;  %v4160_v55 = vpop.f32.mrf.mxu0 }
 0x19c   : > { %v4110_v38 = vpop.f32.mrf.mxu1 }
 0x19d   : > { %v2115_v40 = vadd.f32 %v4110_v38, %v5768_v6  ;;  %v5871_v20 = vpop.f32.mrf.mxu0 }
 0x19e   : > { %v5873_v10 = vpop.f32.mrf.mxu1 }
 0x19f   : > { %v5875_v26 = vadd.f32 %v4160_v55, %v2115_v40  ;;  %v4163_v47 = vpop.f32.mrf.mxu0 }
 0x1a0   : > { %v4113_v54 = vpop.f32.mrf.mxu1 }
 0x1a1   : > { %v2117_v50 = vadd.f32 %v4113_v54, %v5774_v25  ;;  %v5878_v12 = vpop.f32.mrf.mxu0 }
 0x1a2   : > { %v5880_v42 = vpop.f32.mrf.mxu1 }
 0x1a3   : > { %v5882_v56 = vadd.f32 %v4163_v47, %v2117_v50  ;;  %v4166_v22 = vpop.f32.mrf.mxu0 }
 0x1a4   : > { %v4116_v37 = vpop.f32.mrf.mxu1 }
 0x1a5   : > { %v2119_v6 = vadd.f32 %v4116_v37, %v5780_v14  ;;  %v5885_v53 = vpop.f32.mrf.mxu0 }
 0x1a6   : > { %v5887_v1 = vpop.f32.mrf.mxu1 }
 0x1a7   : > { %v5889_v41 = vadd.f32 %v4166_v22, %v2119_v6  ;;  %v4169_v48 = vpop.f32.mrf.mxu0 }
 0x1a8   : > { %v4119_v55 = vpop.f32.mrf.mxu1 }
 0x1a9   : > { %v2121_v25 = vadd.f32 %v4119_v55, %v5786_v2  ;;  %v5892_v38 = vpop.f32.mrf.mxu0 }
 0x1aa   : > { %v5894_v40 = vpop.f32.mrf.mxu1 }
 0x1ab   : > { %v5896_v47 = vadd.f32 %v4169_v48, %v2121_v25  ;;  %v4172_v54 = vpop.f32.mrf.mxu0 }
 0x1ac   : > { %v4122_v50 = vpop.f32.mrf.mxu1 }
 0x1ad   : > { %v2123_v14 = vadd.f32 %v4122_v50, %v5792_v44  ;;  %v5899_v37 = vpop.f32.mrf.mxu0 }
 0x1ae   : > { %6505 = vst [vmem:[#allocation45_spill] sm:$0xff] %v5899_v37  ;;  %v5901_v60 = vpop.f32.mrf.mxu1 }
 0x1af   : > { %v5903_v22 = vadd.f32 %v4172_v54, %v2123_v14  ;;  %v4175_v6 = vpop.f32.mrf.mxu0 }
 0x1b0   : > { %v4125_v45 = vpop.f32.mrf.mxu1 }
 0x1b1   : > { %6506 = vst [vmem:[#allocation46_spill] sm:$0xff] %v5903_v22  ;;  %v2125_v2 = vadd.f32 %v4125_v45, %v5798_v29  ;;  %v5906_v55 = vpop.f32.mrf.mxu0 }
 0x1b2   : > { %6507 = vst [vmem:[#allocation47_spill] sm:$0xff] %v5906_v55  ;;  %v5908_v15 = vpop.f32.mrf.mxu1 }
 0x1b3   : > { %v5910_v48 = vadd.f32 %v4175_v6, %v2125_v2  ;;  %v4178_v25 = vpop.f32.mrf.mxu0 }
 0x1b4   : > { %v4128_v63 = vpop.f32.mrf.mxu1 }
 0x1b5   : > { %6508 = vst [vmem:[#allocation19_spill] sm:$0xff] %v5910_v48  ;;  %v2127_v44 = vadd.f32 %v4128_v63, %v5804_v13  ;;  %v5913_v50 = vpop.f32.mrf.mxu0  ;;  %v2100_v63 = vadd.f32 %v5824_v31, %v5729_v59 }
 0x1b6   : > { %6509 = vst [vmem:[#allocation24_spill] sm:$0xff] %v5913_v50  ;;  %v5915_v37 = vpop.f32.mrf.mxu1 }
 0x1b7   : > { %v5917_v54 = vadd.f32 %v4178_v25, %v2127_v44  ;;  %v4181_v14 = vpop.f32.mrf.mxu0 }
 0x1b8   : > { %v4131_v22 = vpop.f32.mrf.mxu1 }
 0x1b9   : > { %6510 = vst [vmem:[#allocation27_spill] sm:$0xff] %v5917_v54  ;;  %v2129_v29 = vadd.f32 %v4131_v22, %v5810_v35  ;;  %v5920_v45 = vpop.f32.mrf.mxu0 }
 0x1ba   : > { %6511 = vst [vmem:[#allocation29_spill] sm:$0xff] %v5920_v45  ;;  %v5922_v55 = vpop.f32.mrf.mxu1  ;;  %v2368_v45 = vadd.f32 %v5822_v39, %v2100_v63 }
 0x1bb   : > { %v5924_v6 = vadd.f32 %v4181_v14, %v2129_v29  ;;  %v4184_v2 = vpop.f32.mrf.mxu0  ;;  %v2102_v14 = vadd.f32 %v5831_v62, %v5735_v7 }
 0x1bc   : > { %v4134_v48 = vpop.f32.mrf.mxu1 }
 0x1bd   : > { %6512 = vst [vmem:[#allocation31_spill] sm:$0xff] %v5924_v6  ;;  %v2131_v13 = vadd.f32 %v4134_v48, %v5816_v51  ;;  %v5929_v50 = vpop.f32.mrf.mxu0  ;;  %v2104_v51 = vadd.f32 %v5838_v0, %v5741_v18  ;;  %v2106_v18 = vadd.f32 %v5845_v9, %v5747_v4  ;;  %v2108_v9 = vadd.f32 %v5852_v17, %v5753_v32 }
 0x1be   : > { %v5931_v25 = vpop.f32.mrf.mxu1  ;;  %v2110_v17 = vadd.f32 %v5859_v58, %v5759_v23  ;;  %v2112_v58 = vadd.f32 %v5866_v46, %v5765_v52  ;;  %v2114_v46 = vadd.f32 %v5873_v10, %v5771_v16  ;;  %v2116_v10 = vadd.f32 %v5880_v42, %v5777_v11 }
 0x1bf   : > { %v5933_v44 = vadd.f32 %v4184_v2, %v2131_v13  ;;  %v4239_v35 = vpop.f32.mrf.mxu0  ;;  %v2370_v2 = vadd.f32 %v5829_v43, %v2102_v14  ;;  %v2374_v4 = vadd.f32 %v5843_v27, %v2106_v18  ;;  %v2376_v32 = vadd.f32 %v5850_v36, %v2108_v9 }
 0x1c0   : > { %v4189_v22 = vpop.f32.mrf.mxu1  ;;  %v2378_v23 = vadd.f32 %v5857_v8, %v2110_v17  ;;  %v2380_v52 = vadd.f32 %v5864_v28, %v2112_v58  ;;  %v2382_v16 = vadd.f32 %v5871_v20, %v2114_v46  ;;  %v2384_v11 = vadd.f32 %v5878_v12, %v2116_v10 }
 0x1c1   : > { %6513 = vst [vmem:[#allocation33_spill] sm:$0xff] %v5933_v44  ;;  %v2641_v29 = vadd.f32 %v4189_v22, %v5826_v57  ;;  %v2752_v6 = vpop.f32.mrf.mxu0  ;;  %v2118_v42 = vadd.f32 %v5887_v1, %v5783_v21  ;;  %v2120_v1 = vadd.f32 %v5894_v40, %v5789_v5  ;;  %v2122_v40 = vadd.f32 %v5901_v60, %v5795_v19  ;;  %v6514_v19 = vld [vmem:[#allocation45_spill] sm:$0xff] }
 0x1c2   : > { %v2481_v54 = vpop.f32.mrf.mxu1 }
 0x1c3   : > { %v2640_v59 = vadd.f32 %v2481_v54, %v2368_v45  ;;  %v4242_v31 = vpop.f32.mrf.mxu0  ;;  %v5942_v13 = vadd.f32 %v4239_v35, %v2641_v29  ;;  %v2372_v45 = vadd.f32 %v5836_v34, %v2104_v51  ;;  %v2386_v21 = vadd.f32 %v5885_v53, %v2118_v42 }
 0x1c4   : > { %v4192_v48 = vpop.f32.mrf.mxu1  ;;  %v2388_v5 = vadd.f32 %v5892_v38, %v2120_v1  ;;  %v2390_v60 = vadd.f32 %v6514_v19, %v2122_v40 }
 0x1c5   : > { %v5944_v44 = vadd.f32 %v2752_v6, %v2640_v59  ;;  %v2643_v39 = vadd.f32 %v4192_v48, %v5833_v24  ;;  %v2762_v63 = vpop.f32.mrf.mxu0  ;;  %v2945_v0 = vsel %vm2943_vm4, %v5942_v13, 0.0 }
 0x1c6   : > { %v2491_v7 = vpop.f32.mrf.mxu1 }
 0x1c7   : > { %v2944_v57 = vsel %vm2943_vm4, %v5944_v44, 0.0  ;;  %v2642_v62 = vadd.f32 %v2491_v7, %v2370_v2  ;;  %v4245_v54 = vpop.f32.mrf.mxu0  ;;  %v5954_v6 = vadd.f32 %v4242_v31, %v2643_v39 }
 0x1c8   : > { %v4195_v43 = vpop.f32.mrf.mxu1  ;;  %v2946_v14 = vadd.f32 %v2945_v0, %v2944_v57 }
 0x1c9   : > { %v5956_v24 = vadd.f32 %v2762_v63, %v2642_v62  ;;  %v2645_v35 = vadd.f32 %v4195_v43, %v5840_v49  ;;  %v2772_v22 = vpop.f32.mrf.mxu0  ;;  %v2949_v2 = vsel %vm2943_vm4, %v5954_v6, 0.0 }
 0x1ca   : > { %v2501_v29 = vpop.f32.mrf.mxu1 }
 0x1cb   : > { %v2947_v59 = vsel %vm2943_vm4, %v5956_v24, 0.0  ;;  %v2644_v34 = vadd.f32 %v2501_v29, %v2372_v45  ;;  %v4248_v51 = vpop.f32.mrf.mxu0  ;;  %v5966_v39 = vadd.f32 %v4245_v54, %v2645_v35 }
 0x1cc   : > { %v2948_v48 = vadd.f32 %v2947_v59, %v2946_v14  ;;  %v4198_v31 = vpop.f32.mrf.mxu1 }
 0x1cd   : > { %v5968_v49 = vadd.f32 %v2772_v22, %v2644_v34  ;;  %v2647_v63 = vadd.f32 %v4198_v31, %v5847_v33  ;;  %v2782_v7 = vpop.f32.mrf.mxu0  ;;  %v2953_v0 = vsel %vm2943_vm4, %v5966_v39, 0.0 }
 0x1ce   : > { %v2950_v57 = vadd.f32 %v2949_v2, %v2948_v48  ;;  %v2511_v62 = vpop.f32.mrf.mxu1 }
 0x1cf   : > { %v2951_v27 = vsel %vm2943_vm4, %v5968_v49, 0.0  ;;  %v2646_v45 = vadd.f32 %v2511_v62, %v2374_v4  ;;  %v4251_v18 = vpop.f32.mrf.mxu0  ;;  %v5978_v35 = vadd.f32 %v4248_v51, %v2647_v63 }
 0x1d0   : > { %v2952_v43 = vadd.f32 %v2951_v27, %v2950_v57  ;;  %v4201_v54 = vpop.f32.mrf.mxu1 }
 0x1d1   : > { %v5980_v33 = vadd.f32 %v2782_v7, %v2646_v45  ;;  %v2649_v22 = vadd.f32 %v4201_v54, %v5854_v3  ;;  %v2792_v14 = vpop.f32.mrf.mxu0  ;;  %v2957_v48 = vsel %vm2943_vm4, %v5978_v35, 0.0 }
 0x1d2   : > { %v2954_v29 = vadd.f32 %v2953_v0, %v2952_v43  ;;  %v2521_v59 = vpop.f32.mrf.mxu1 }
 0x1d3   : > { %v2955_v36 = vsel %vm2943_vm4, %v5980_v33, 0.0  ;;  %v2648_v34 = vadd.f32 %v2521_v59, %v2376_v32  ;;  %v4254_v4 = vpop.f32.mrf.mxu0  ;;  %v5990_v31 = vadd.f32 %v4251_v18, %v2649_v22 }
 0x1d4   : > { %v2956_v9 = vadd.f32 %v2955_v36, %v2954_v29  ;;  %v4204_v51 = vpop.f32.mrf.mxu1 }
 0x1d5   : > { %v5992_v3 = vadd.f32 %v2792_v14, %v2648_v34  ;;  %v2651_v2 = vadd.f32 %v4204_v51, %v5861_v61  ;;  %v2802_v63 = vpop.f32.mrf.mxu0  ;;  %v2961_v32 = vsel %vm2943_vm4, %v5990_v31, 0.0 }
 0x1d6   : > { %v2958_v7 = vadd.f32 %v2957_v48, %v2956_v9  ;;  %v2531_v57 = vpop.f32.mrf.mxu1 }
 0x1d7   : > { %v2959_v8 = vsel %vm2943_vm4, %v5992_v3, 0.0  ;;  %v2650_v62 = vadd.f32 %v2531_v57, %v2378_v23  ;;  %v4257_v27 = vpop.f32.mrf.mxu0  ;;  %v6002_v17 = vadd.f32 %v4254_v4, %v2651_v2 }
 0x1d8   : > { %v2960_v45 = vadd.f32 %v2959_v8, %v2958_v7  ;;  %v4207_v18 = vpop.f32.mrf.mxu1 }
 0x1d9   : > { %v6004_v61 = vadd.f32 %v2802_v63, %v2650_v62  ;;  %v2653_v43 = vadd.f32 %v4207_v18, %v5868_v30  ;;  %v2812_v54 = vpop.f32.mrf.mxu0  ;;  %v2965_v34 = vsel %vm2943_vm4, %v6002_v17, 0.0 }
 0x1da   : > { %v2962_v0 = vadd.f32 %v2961_v32, %v2960_v45  ;;  %v2541_v22 = vpop.f32.mrf.mxu1 }
 0x1db   : > { %v2963_v28 = vsel %vm2943_vm4, %v6004_v61, 0.0  ;;  %v2652_v14 = vadd.f32 %v2541_v22, %v2380_v52  ;;  %v4260_v29 = vpop.f32.mrf.mxu0  ;;  %v6014_v4 = vadd.f32 %v4257_v27, %v2653_v43 }
 0x1dc   : > { %v2964_v59 = vadd.f32 %v2963_v28, %v2962_v0  ;;  %v4210_v36 = vpop.f32.mrf.mxu1 }
 0x1dd   : > { %v6016_v30 = vadd.f32 %v2812_v54, %v2652_v14  ;;  %v2655_v23 = vadd.f32 %v4210_v36, %v5875_v26  ;;  %v2822_v58 = vpop.f32.mrf.mxu0  ;;  %v2969_v57 = vsel %vm2943_vm4, %v6014_v4, 0.0 }
 0x1de   : > { %v2966_v9 = vadd.f32 %v2965_v34, %v2964_v59  ;;  %v2551_v51 = vpop.f32.mrf.mxu1 }
 0x1df   : > { %v2967_v20 = vsel %vm2943_vm4, %v6016_v30, 0.0  ;;  %v2654_v48 = vadd.f32 %v2551_v51, %v2382_v16  ;;  %v4263_v2 = vpop.f32.mrf.mxu0  ;;  %v6026_v8 = vadd.f32 %v4260_v29, %v2655_v23 }
 0x1e0   : > { %v2968_v63 = vadd.f32 %v2967_v20, %v2966_v9  ;;  %v4213_v7 = vpop.f32.mrf.mxu1 }
 0x1e1   : > { %v6028_v26 = vadd.f32 %v2822_v58, %v2654_v48  ;;  %v2657_v62 = vadd.f32 %v4213_v7, %v5882_v56  ;;  %v2832_v27 = vpop.f32.mrf.mxu0  ;;  %v2973_v54 = vsel %vm2943_vm4, %v6026_v8, 0.0 }
 0x1e2   : > { %v2970_v52 = vadd.f32 %v2969_v57, %v2968_v63  ;;  %v2561_v46 = vpop.f32.mrf.mxu1 }
 0x1e3   : > { %v2971_v12 = vsel %vm2943_vm4, %v6028_v26, 0.0  ;;  %v2656_v45 = vadd.f32 %v2561_v46, %v2384_v11  ;;  %v4266_v18 = vpop.f32.mrf.mxu0  ;;  %v6038_v0 = vadd.f32 %v4263_v2, %v2657_v62  ;;  %v6515_v11 = vld [vmem:[#allocation41_spill] sm:$0xff] }
 0x1e4   : > { %v2972_v32 = vadd.f32 %v2971_v12, %v2970_v52  ;;  %v4216_v43 = vpop.f32.mrf.mxu1  ;;  %v2124_v42 = vadd.f32 %v5908_v15, %v6515_v11  ;;  %v6517_v15 = vld [vmem:[#allocation47_spill] sm:$0xff] }
 0x1e5   : > { %v6040_v56 = vadd.f32 %v2832_v27, %v2656_v45  ;;  %v2659_v22 = vadd.f32 %v4216_v43, %v5889_v41  ;;  %v2842_v28 = vpop.f32.mrf.mxu0  ;;  %v2977_v34 = vsel %vm2943_vm4, %v6038_v0, 0.0  ;;  %v6516_v27 = vld [vmem:[#allocation46_spill] sm:$0xff]  ;;  %v6522_v11 = vld [vmem:[#allocation27_spill] sm:$0xff] }
 0x1e6   : > { %v2974_v14 = vadd.f32 %v2973_v54, %v2972_v32  ;;  %v2571_v29 = vpop.f32.mrf.mxu1  ;;  %v2392_v32 = vadd.f32 %v6517_v15, %v2124_v42  ;;  %v6518_v43 = vld [vmem:[#allocation42_spill] sm:$0xff] }
 0x1e7   : > { %v2975_v53 = vsel %vm2943_vm4, %v6040_v56, 0.0  ;;  %v2658_v16 = vadd.f32 %v2571_v29, %v2386_v21  ;;  %v4269_v10 = vpop.f32.mrf.mxu0  ;;  %v6050_v23 = vadd.f32 %v4266_v18, %v2659_v22  ;;  %v2126_v54 = vadd.f32 %v5915_v37, %v6518_v43  ;;  %v6520_v37 = vld [vmem:[#allocation24_spill] sm:$0xff] }
 0x1e8   : > { %v2976_v59 = vadd.f32 %v2975_v53, %v2974_v14  ;;  %v4219_v36 = vpop.f32.mrf.mxu1 }
 0x1e9   : > { %v6052_v41 = vadd.f32 %v2842_v28, %v2658_v16  ;;  %v2661_v58 = vadd.f32 %v4219_v36, %v5896_v47  ;;  %v2852_v9 = vpop.f32.mrf.mxu0  ;;  %v2981_v57 = vsel %vm2943_vm4, %v6050_v23, 0.0  ;;  %v6519_v16 = vld [vmem:[#allocation19_spill] sm:$0xff] }
 0x1ea   : > { %v2978_v51 = vadd.f32 %v2977_v34, %v2976_v59  ;;  %v2581_v20 = vpop.f32.mrf.mxu1 }
 0x1eb   : > { %v2979_v38 = vsel %vm2943_vm4, %v6052_v41, 0.0  ;;  %v2660_v48 = vadd.f32 %v2581_v20, %v2388_v5  ;;  %v4272_v2 = vpop.f32.mrf.mxu0  ;;  %v6062_v62 = vadd.f32 %v4269_v10, %v2661_v58 }
 0x1ec   : > { %v2980_v63 = vadd.f32 %v2979_v38, %v2978_v51  ;;  %v4222_v7 = vpop.f32.mrf.mxu1  ;;  %v6521_v51 = vld [vmem:[#allocation43_spill] sm:$0xff] }
 0x1ed   : > { %v6064_v47 = vadd.f32 %v2852_v9, %v2660_v48  ;;  %v2663_v52 = vadd.f32 %v4222_v7, %v6516_v27  ;;  %v2862_v46 = vpop.f32.mrf.mxu0  ;;  %v2985_v14 = vsel %vm2943_vm4, %v6062_v62, 0.0  ;;  %v2394_v9 = vadd.f32 %v6520_v37, %v2126_v54  ;;  %v6525_v54 = vld [vmem:[#allocation31_spill] sm:$0xff] }
 0x1ee   : > { %v2982_v12 = vadd.f32 %v2981_v57, %v2980_v63  ;;  %v2591_v45 = vpop.f32.mrf.mxu1  ;;  %v2128_v20 = vadd.f32 %v5922_v55, %v6521_v51  ;;  %v6523_v55 = vld [vmem:[#allocation29_spill] sm:$0xff] }
 0x1ef   : > { %v2983_v18 = vsel %vm2943_vm4, %v6064_v47, 0.0  ;;  %v2662_v21 = vadd.f32 %v2591_v45, %v2390_v60  ;;  %v4275_v1 = vpop.f32.mrf.mxu0  ;;  %v6074_v29 = vadd.f32 %v4272_v2, %v2663_v52  ;;  %v6524_v45 = vld [vmem:[#allocation44_spill] sm:$0xff]  ;;  %v6526_v51 = vld [vmem:[#allocation33_spill] sm:$0xff] }
 0x1f0   : > { %v2984_v22 = vadd.f32 %v2983_v18, %v2982_v12  ;;  %v4225_v28 = vpop.f32.mrf.mxu1  ;;  %v2396_v12 = vadd.f32 %v6523_v55, %v2128_v20  ;;  %v2130_v18 = vadd.f32 %v5931_v25, %v6524_v45 }
 0x1f1   : > { %v6076_v53 = vadd.f32 %v2862_v46, %v2662_v21  ;;  %v2665_v10 = vadd.f32 %v4225_v28, %v6519_v16  ;;  %v2872_v5 = vpop.f32.mrf.mxu0  ;;  %v2989_v2 = vsel %vm2943_vm4, %v6074_v29, 0.0 }
 0x1f2   : > { %v2986_v40 = vadd.f32 %v2985_v14, %v2984_v22  ;;  %v2601_v59 = vpop.f32.mrf.mxu1 }
 0x1f3   : > { %v2987_v36 = vsel %vm2943_vm4, %v6076_v53, 0.0  ;;  %v2664_v34 = vadd.f32 %v2601_v59, %v2392_v32  ;;  %v4278_v58 = vpop.f32.mrf.mxu0  ;;  %v6086_v19 = vadd.f32 %v4275_v1, %v2665_v10 }
 0x1f4   : > { %v2988_v38 = vadd.f32 %v2987_v36, %v2986_v40  ;;  %v4228_v48 = vpop.f32.mrf.mxu1  ;;  %v2398_v40 = vadd.f32 %v5929_v50, %v2130_v18 }
 0x1f5   : > { %v6088_v60 = vadd.f32 %v2872_v5, %v2664_v34  ;;  %v2667_v42 = vadd.f32 %v4228_v48, %v6522_v11  ;;  %v2882_v63 = vpop.f32.mrf.mxu0  ;;  %v2993_v15 = vsel %vm2943_vm4, %v6086_v19, 0.0 }
 0x1f6   : > { %v2990_v7 = vadd.f32 %v2989_v2, %v2988_v38  ;;  %v2611_v57 = vpop.f32.mrf.mxu1 }
 0x1f7   : > { %v2991_v27 = vsel %vm2943_vm4, %v6088_v60, 0.0  ;;  %v2666_v52 = vadd.f32 %v2611_v57, %v2394_v9  ;;  %v4281_v46 = vpop.f32.mrf.mxu0  ;;  %v2938_v32 = vadd.f32 %v4278_v58, %v2667_v42 }
 0x1f8   : > { %v2992_v21 = vadd.f32 %v2991_v27, %v2990_v7  ;;  %v4231_v1 = vpop.f32.mrf.mxu1 }
 0x1f9   : > { %v2937_v43 = vadd.f32 %v2882_v63, %v2666_v52  ;;  %v2669_v22 = vadd.f32 %v4231_v1, %v6525_v54  ;;  %v2892_v28 = vpop.f32.mrf.mxu0  ;;  %v2997_v34 = vsel %vm2943_vm4, %v2938_v32, 0.0 }
 0x1fa   : > { %v2994_v14 = vadd.f32 %v2993_v15, %v2992_v21  ;;  %v2621_v16 = vpop.f32.mrf.mxu1 }
 0x1fb   : > { %v2995_v10 = vsel %vm2943_vm4, %v2937_v43, 0.0  ;;  %v2668_v5 = vadd.f32 %v2621_v16, %v2396_v12  ;;  %v4284_v25 = vpop.f32.mrf.mxu0  ;;  %v2940_v37 = vadd.f32 %v4281_v46, %v2669_v22 }
 0x1fc   : > { %v2996_v59 = vadd.f32 %v2995_v10, %v2994_v14  ;;  %v4234_v36 = vpop.f32.mrf.mxu1 }
 0x1fd   : > { %v2939_v9 = vadd.f32 %v2892_v28, %v2668_v5  ;;  %v2671_v58 = vadd.f32 %v4234_v36, %v6526_v51  ;;  %v2902_v42 = vpop.f32.mrf.mxu0  ;;  %v3001_v50 = vsel %vm2943_vm4, %v2940_v37, 0.0 }
 0x1fe   : > { %v2998_v20 = vadd.f32 %v2997_v34, %v2996_v59  ;;  %v2631_v38 = vpop.f32.mrf.mxu1 }
 0x1ff   : > { %v2999_v48 = vsel %vm2943_vm4, %v2939_v9, 0.0  ;;  %v2670_v2 = vadd.f32 %v2631_v38, %v2398_v40  ;;  %v2942_v63 = vadd.f32 %v4284_v25, %v2671_v58 }
 0x200   : > { %v3000_v11 = vadd.f32 %v2999_v48, %v2998_v20 }
 0x201   : > { %v2941_v7 = vadd.f32 %v2902_v42, %v2670_v2  ;;  %v3005_v46 = vsel %vm2943_vm4, %v2942_v63, 0.0 }
 0x202   : > { %v3002_v57 = vadd.f32 %v3001_v50, %v3000_v11 }
 0x203   : > { %v3003_v27 = vsel %vm2943_vm4, %v2941_v7, 0.0 }
 0x204   : > { %v3004_v52 = vadd.f32 %v3003_v27, %v3002_v57 }
 0x206   : > { %v3006_v55 = vadd.f32 %v3005_v46, %v3004_v52 }
 0x208   : > { %v3007_v12 = vrot.slane %v3006_v55, 4 }
 0x20a   : > { %v3008_v45 = vadd.f32 %v3007_v12, %v3006_v55 }
 0x20c   : > { %v3009_v18 = vrot.slane %v3008_v45, 2 }
 0x20e   : > { %v3010_v21 = vadd.f32 %v3009_v18, %v3008_v45 }
 0x210   : > { %v3011_v1 = vrot.slane %v3010_v21, 1 }
 0x212   : > { %v3012_v15 = vadd.f32 %v3011_v1, %v3010_v21 }
 0x214   : > { %v3013_v54 = vmul.f32 0.00390625, %v3012_v15  ;;  %3148 = vst.msk [vmem:[%s6110_s27] sm:$0x1] %vm3147_vm5, %v3012_v15 }
 0x216   : > { %v3024_v22 = vsub.f32 %v6004_v61, %v3013_v54  ;;  %v3025_v28 = vsub.f32 %v6002_v17, %v3013_v54  ;;  %v3026_v14 = vsub.f32 %v6016_v30, %v3013_v54  ;;  %v6118_v16 = vsub.f32 %v6014_v4, %v3013_v54 }
 0x217   : > { %v6121_v10 = vsub.f32 %v6028_v26, %v3013_v54  ;;  %v6124_v5 = vsub.f32 %v6026_v8, %v3013_v54  ;;  %v6127_v40 = vsub.f32 %v6040_v56, %v3013_v54  ;;  %v6130_v59 = vsub.f32 %v6038_v0, %v3013_v54 }
 0x218   : > { %v6133_v61 = vsub.f32 %v6052_v41, %v3013_v54  ;;  %v6136_v17 = vsub.f32 %v6050_v23, %v3013_v54  ;;  %v6139_v4 = vsub.f32 %v6064_v47, %v3013_v54  ;;  %v6142_v30 = vsub.f32 %v6062_v62, %v3013_v54 }
 0x219   : > { %v6145_v8 = vsub.f32 %v6076_v53, %v3013_v54  ;;  %v6148_v26 = vsub.f32 %v6074_v29, %v3013_v54  ;;  %v6151_v0 = vsub.f32 %v6088_v60, %v3013_v54  ;;  %v6154_v56 = vsub.f32 %v6086_v19, %v3013_v54 }
 0x21a   : > { %v6156_v23 = vsub.f32 %v2937_v43, %v3013_v54  ;;  %v6158_v41 = vsub.f32 %v2938_v32, %v3013_v54  ;;  %v6160_v47 = vsub.f32 %v2939_v9, %v3013_v54  ;;  %v6162_v62 = vsub.f32 %v2940_v37, %v3013_v54 }
 0x21b   : > { %v6164_v36 = vsub.f32 %v2941_v7, %v3013_v54  ;;  %v6166_v53 = vsub.f32 %v2942_v63, %v3013_v54  ;;  %v3014_v29 = vsub.f32 %v5944_v44, %v3013_v54  ;;  %v3015_v60 = vsub.f32 %v5942_v13, %v3013_v54 }
 0x21c   : > { %v3016_v25 = vsub.f32 %v5956_v24, %v3013_v54  ;;  %v3017_v19 = vsub.f32 %v5954_v6, %v3013_v54  ;;  %v3018_v32 = vsub.f32 %v5968_v49, %v3013_v54  ;;  %v3019_v37 = vsub.f32 %v5966_v39, %v3013_v54 }
 0x21d   : > { %v3046_v43 = vmul.f32 %v3014_v29, %v3014_v29  ;;  %v3047_v34 = vmul.f32 %v3015_v60, %v3015_v60  ;;  %v3020_v44 = vsub.f32 %v5980_v33, %v3013_v54  ;;  %v3021_v6 = vsub.f32 %v5978_v35, %v3013_v54 }
 0x21e   : > { %v3048_v9 = vmul.f32 %v3016_v25, %v3016_v25  ;;  %v3049_v51 = vmul.f32 %v3017_v19, %v3017_v19  ;;  %v3050_v13 = vmul.f32 %v3018_v32, %v3018_v32  ;;  %v3051_v2 = vmul.f32 %v3019_v37, %v3019_v37 }
 0x21f   : > { %v3078_v58 = vsel %vm2943_vm4, %v3046_v43, 0.0  ;;  %v3079_v20 = vsel %vm2943_vm4, %v3047_v34, 0.0  ;;  %v3022_v39 = vsub.f32 %v5992_v3, %v3013_v54  ;;  %v3052_v42 = vmul.f32 %v3020_v44, %v3020_v44 }
 0x220   : > { %v3080_v38 = vadd.f32 %v3079_v20, %v3078_v58  ;;  %v3081_v24 = vsel %vm2943_vm4, %v3048_v9, 0.0  ;;  %v3083_v49 = vsel %vm2943_vm4, %v3049_v51, 0.0  ;;  %v3085_v50 = vsel %vm2943_vm4, %v3050_v13, 0.0 }
 0x221   : > { %v3023_v7 = vsub.f32 %v5990_v31, %v3013_v54  ;;  %v3053_v57 = vmul.f32 %v3021_v6, %v3021_v6  ;;  %v3087_v33 = vsel %vm2943_vm4, %v3051_v2, 0.0  ;;  %v3054_v52 = vmul.f32 %v3022_v39, %v3022_v39 }
 0x222   : > { %v3082_v48 = vadd.f32 %v3081_v24, %v3080_v38  ;;  %v3089_v46 = vsel %vm2943_vm4, %v3052_v42, 0.0  ;;  %v3056_v18 = vmul.f32 %v3024_v22, %v3024_v22  ;;  %v3057_v1 = vmul.f32 %v3025_v28, %v3025_v28 }
 0x223   : > { %v3055_v55 = vmul.f32 %v3023_v7, %v3023_v7  ;;  %v3091_v12 = vsel %vm2943_vm4, %v3053_v57, 0.0  ;;  %v3093_v3 = vsel %vm2943_vm4, %v3054_v52, 0.0  ;;  %v3058_v54 = vmul.f32 %v3026_v14, %v3026_v14 }
 0x224   : > { %v3084_v11 = vadd.f32 %v3083_v49, %v3082_v48  ;;  %v3097_v29 = vsel %vm2943_vm4, %v3056_v18, 0.0  ;;  %v3059_v25 = vmul.f32 %v6118_v16, %v6118_v16  ;;  %v3099_v19 = vsel %vm2943_vm4, %v3057_v1, 0.0 }
 0x225   : > { %v3095_v15 = vsel %vm2943_vm4, %v3055_v55, 0.0  ;;  %v3060_v22 = vmul.f32 %v6121_v10, %v6121_v10  ;;  %v3101_v34 = vsel %vm2943_vm4, %v3058_v54, 0.0  ;;  %v3061_v28 = vmul.f32 %v6124_v5, %v6124_v5 }
 0x226   : > { %v3086_v63 = vadd.f32 %v3085_v50, %v3084_v11  ;;  %v3103_v14 = vsel %vm2943_vm4, %v3059_v25, 0.0  ;;  %v3062_v37 = vmul.f32 %v6127_v40, %v6127_v40  ;;  %v3063_v58 = vmul.f32 %v6130_v59, %v6130_v59 }
 0x227   : > { %v3105_v16 = vsel %vm2943_vm4, %v3060_v22, 0.0  ;;  %v3107_v10 = vsel %vm2943_vm4, %v3061_v28, 0.0  ;;  %v3064_v38 = vmul.f32 %v6133_v61, %v6133_v61  ;;  %v3065_v13 = vmul.f32 %v6136_v17, %v6136_v17 }
 0x228   : > { %v3088_v27 = vadd.f32 %v3087_v33, %v3086_v63  ;;  %v3109_v5 = vsel %vm2943_vm4, %v3062_v37, 0.0  ;;  %v3111_v40 = vsel %vm2943_vm4, %v3063_v58, 0.0  ;;  %v3066_v48 = vmul.f32 %v6139_v4, %v6139_v4 }
 0x229   : > { %v3113_v59 = vsel %vm2943_vm4, %v3064_v38, 0.0  ;;  %v3067_v2 = vmul.f32 %v6142_v30, %v6142_v30  ;;  %v3115_v61 = vsel %vm2943_vm4, %v3065_v13, 0.0  ;;  %v3068_v11 = vmul.f32 %v6145_v8, %v6145_v8 }
 0x22a   : > { %v3090_v35 = vadd.f32 %v3089_v46, %v3088_v27  ;;  %v3117_v17 = vsel %vm2943_vm4, %v3066_v48, 0.0  ;;  %v3069_v42 = vmul.f32 %v6148_v26, %v6148_v26  ;;  %v3070_v63 = vmul.f32 %v6151_v0, %v6151_v0 }
 0x22b   : > { %v3119_v4 = vsel %vm2943_vm4, %v3067_v2, 0.0  ;;  %v3121_v30 = vsel %vm2943_vm4, %v3068_v11, 0.0  ;;  %v3071_v57 = vmul.f32 %v6154_v56, %v6154_v56  ;;  %v3072_v27 = vmul.f32 %v6156_v23, %v6156_v23 }
 0x22c   : > { %v3092_v45 = vadd.f32 %v3091_v12, %v3090_v35  ;;  %v3123_v8 = vsel %vm2943_vm4, %v3069_v42, 0.0  ;;  %v3125_v26 = vsel %vm2943_vm4, %v3070_v63, 0.0  ;;  %v3073_v46 = vmul.f32 %v6158_v41, %v6158_v41 }
 0x22d   : > { %v3127_v0 = vsel %vm2943_vm4, %v3071_v57, 0.0  ;;  %v3074_v55 = vmul.f32 %v6160_v47, %v6160_v47  ;;  %v3129_v56 = vsel %vm2943_vm4, %v3072_v27, 0.0  ;;  %v3076_v41 = vmul.f32 %v6164_v36, %v6164_v36 }
 0x22e   : > { %v3094_v21 = vadd.f32 %v3093_v3, %v3092_v45  ;;  %v3075_v45 = vmul.f32 %v6162_v62, %v6162_v62  ;;  %v3131_v23 = vsel %vm2943_vm4, %v3073_v46, 0.0  ;;  %v3077_v47 = vmul.f32 %v6166_v53, %v6166_v53 }
 0x22f   : > { %v3133_v3 = vsel %vm2943_vm4, %v3074_v55, 0.0  ;;  %v3137_v62 = vsel %vm2943_vm4, %v3076_v41, 0.0 }
 0x230   : > { %v3096_v31 = vadd.f32 %v3095_v15, %v3094_v21  ;;  %v3135_v1 = vsel %vm2943_vm4, %v3075_v45, 0.0  ;;  %v3139_v54 = vsel %vm2943_vm4, %v3077_v47, 0.0 }
 0x232   : > { %v3098_v60 = vadd.f32 %v3097_v29, %v3096_v31 }
 0x234   : > { %v3100_v43 = vadd.f32 %v3099_v19, %v3098_v60 }
 0x236   : > { %v3102_v32 = vadd.f32 %v3101_v34, %v3100_v43 }
 0x238   : > { %v3104_v9 = vadd.f32 %v3103_v14, %v3102_v32 }
 0x23a   : > { %v3106_v51 = vadd.f32 %v3105_v16, %v3104_v9 }
 0x23c   : > { %v3108_v20 = vadd.f32 %v3107_v10, %v3106_v51 }
 0x23e   : > { %v3110_v44 = vadd.f32 %v3109_v5, %v3108_v20 }
 0x240   : > { %v3112_v24 = vadd.f32 %v3111_v40, %v3110_v44 }
 0x242   : > { %v3114_v6 = vadd.f32 %v3113_v59, %v3112_v24 }
 0x244   : > { %v3116_v49 = vadd.f32 %v3115_v61, %v3114_v6 }
 0x246   : > { %v3118_v39 = vadd.f32 %v3117_v17, %v3116_v49 }
 0x248   : > { %v3120_v50 = vadd.f32 %v3119_v4, %v3118_v39 }
 0x24a   : > { %v3122_v7 = vadd.f32 %v3121_v30, %v3120_v50 }
 0x24c   : > { %v3124_v33 = vadd.f32 %v3123_v8, %v3122_v7 }
 0x24e   : > { %v3126_v52 = vadd.f32 %v3125_v26, %v3124_v33 }
 0x250   : > { %v3128_v35 = vadd.f32 %v3127_v0, %v3126_v52 }
 0x252   : > { %v3130_v12 = vadd.f32 %v3129_v56, %v3128_v35 }
 0x254   : > { %v3132_v18 = vadd.f32 %v3131_v23, %v3130_v12 }
 0x256   : > { %v3134_v21 = vadd.f32 %v3133_v3, %v3132_v18 }
 0x258   : > { %v3136_v15 = vadd.f32 %v3135_v1, %v3134_v21 }
 0x25a   : > { %v3138_v31 = vadd.f32 %v3137_v62, %v3136_v15 }
 0x25c   : > { %v3140_v29 = vadd.f32 %v3139_v54, %v3138_v31 }
 0x25e   : > { %v3141_v60 = vrot.slane %v3140_v29, 4 }
 0x260   : > { %v3142_v36 = vadd.f32 %v3141_v60, %v3140_v29 }
 0x262   : > { %v3143_v25 = vrot.slane %v3142_v36, 2 }
 0x264   : > { %v3144_v19 = vadd.f32 %v3143_v25, %v3142_v36 }
 0x266   : > { %v3145_v43 = vrot.slane %v3144_v19, 1 }
 0x268   : > { %v3146_v53 = vadd.f32 %v3145_v43, %v3144_v19 }
 0x26a   : > { %3149 = vst.msk [vmem:[%s6110_s27 + $0x1] sm:$0x1] %vm3147_vm5, %v3146_v53 }
 0x26b   : > { %4340 = shalt.err (!%p4337_p3)
}
 0x26c   : > { %s4341_s14 = scalar_lea.hbm %s3162_s4, 32  ;;  %s4345_s21 = scalar_lea.hbm %s6288_s2, 64 }
 0x26d   : > { %p4342_p4 = scmp.ne.s32.totalorder %s3162_s4, %s4341_s14  ;;  %p4346_p9 = scmp.lt.s32.totalorder %s3162_s4, %s6288_s2 }
 0x26e   : > { %p4347_p10 = scmp.lt.s32.totalorder %s4345_s21, %s4341_s14 }
 0x26f   : > { %p4343_p7 = pnand %p4342_p4, %p4443_p5 }
 0x270   : > { %p4348_p11 = por %p4347_p10, %p4346_p9 }
 0x271   : > { %p4344_p8 = pneg %p4343_p7 }
 0x273   : > { %p4349_p12 = pnand %p4348_p11, %p4344_p8 }
 0x275   : > { %4352 = shalt.err (!%p4349_p12)
}
 0x276   : > { %4288 = dma.vmem_to_hbm [thread:$0]  (%p4443_p5), %s3165_s29, 32, %s3162_s4, %s3151_s5  }
 0x277 PF: > { %p4294_p13 = scmp.ge.s32.totalorder %s4387_s12, 2  ;;  %s3176_s24 = sand.u32 1, %s4375_s9  }
 0x278   : > { %s3177_s25 = scalar_lea.sflag [#allocation3], %s3176_s24 }
 0x279   : > { %p4291_p0 = pnand %p4294_p13, %p4447_p6 }
 0x27b   : > { %p4292_p1 = pneg %p4291_p0 }
 0x27d   : > { %4370 = dma.done.wait (%p4292_p1), %s3177_s25, 32  }
 0x27e   : > { %4372 = vsyncadd (%p4292_p1), %s3177_s25, 4294967264  ;;  %p12_p2 = scmp.ge.s32.totalorder %s4430_s15, 4   ;;  %s6527_s9 = smov %s4379_s10 }
 0x27f   : > { %s6528_s10 = smov %s4383_s11  ;;  %s6529_s11 = smov %s4441_s18 }
 0x280   : > { %s6530_s12 = smov %s4430_s15  ;;  %14 = sbr.rel (!%p12_p2) target bundleno = 3 (0x3), region = 71 }
 0x285   :  { %3182 = vsyncpa [#allocation3], 1 }
 0x286   :  { %3184 = vsyncpa [#allocation3 + $0x1], 1 }

</bundles_post_ra>
